<compile_context>
chip_gen: v7x
topology: tpu7x:2x2x1
jax: 0.10.0
libtpu: 0.0.40
codegen_flags: <defaults>
</compile_context>

<pallas_src>
import math

import jax
import jax.numpy as jnp
from jax import lax
from jax.experimental import pallas as pl
from jax.experimental.pallas import tpu as pltpu


_CHUNK = 8    # timesteps per scan chunk (= f32 sublane count -> aligned slab stores)
_LANE = 128   # lane width


def _round_up(x, m):
    return ((x + m - 1) // m) * m


def _silu_ref(x):
    return x * (1.0 / (1.0 + jnp.exp(-x)))


def _softplus(x):
    # numerically stable softplus
    return jnp.maximum(x, 0.0) + jnp.log1p(jnp.exp(-jnp.abs(x)))


def _mamba_kernel(x_ref, w_in_ref, conv_w_ref, conv_b_ref, w_x_ref, b_dt_ref,
                  neg_a_t_ref, d_ref, w_out_ref, out_ref,
                  xe_s, xs_s, res_s, delta_s, bm_s, cm_s, ys_s, state_s, tail_s):
    li = pl.program_id(1)                       # sequence-tile index (arbitrary axis)
    Lt = x_ref.shape[1]                         # sequence tile length
    d_in = conv_w_ref.shape[1]                  # lane-padded d_inner
    d_state = neg_a_t_ref.shape[0]
    K = conv_w_ref.shape[0]                     # d_conv
    assert Lt % _CHUNK == 0 and d_in % _LANE == 0 and K <= 8

    def silu(v):
        # sigmoid via EUP exp + approx reciprocal (frees VPU divide refinement)
        return v * pl.reciprocal(1.0 + jnp.exp(-v), approx=True)

    # ---- reset carried state at the first sequence tile of every batch row
    @pl.when(li == 0)
    def _():
        state_s[...] = jnp.zeros_like(state_s)
        tail_s[...] = jnp.zeros_like(tail_s)

    # ---- fused in_proj: one bf16 MXU launch -> [x branch | residual branch]
    xr = jnp.dot(x_ref[0], w_in_ref[...], preferred_element_type=jnp.float32)
    xi = xr[:, :d_in]                           # (Lt, d_in) f32, lane-aligned view
    res_s[...] = silu(xr[:, d_in:])             # gate staged; not live across the scan

    # ---- depthwise causal conv1d; tile boundary handled by the carried tail rows
    xe_s[pl.ds(8 - (K - 1), K - 1), :] = tail_s[...]      # last K-1 xi rows of prev tile
    xe_s[pl.ds(8, Lt), :] = xi
    tail_s[...] = xe_s[pl.ds(8 + Lt - (K - 1), K - 1), :]  # tail for the next tile
    cw = conv_w_ref[...]                        # (K, d_in)
    conv = xi * cw[K - 1:K, :]                  # tap with shift 0
    for s in range(1, K):                       # K-1 shifted taps from the staged buffer
        conv = conv + xe_s[pl.ds(8 - s, Lt), :] * cw[K - 1 - s:K - s, :]
    xs = silu(conv + conv_b_ref[...])
    xs_s[...] = xs                              # also the "u" operand of the scan

    # ---- fused x_proj (+ folded dt_proj): one bf16 MXU launch -> [delta_pre | B | C]
    xdbl = jnp.dot(xs.astype(jnp.bfloat16), w_x_ref[...],
                   preferred_element_type=jnp.float32)
    delta_s[...] = _softplus(xdbl[:, :d_in] + b_dt_ref[...])
    bm_s[...] = xdbl[:, d_in:d_in + d_state]
    cm_s[...] = xdbl[:, d_in + d_state:]

    # ---- selective scan: state (d_state, d_in) carried across chunks AND tiles.
    # Per-chunk batched exp / broadcasts; only the multiply-add recurrence is serial.
    # TODO(synk): SSD chunked-matmul reformulation to move this onto the MXU.
    def chunk_body(c, state):
        t0 = pl.multiple_of(c * _CHUNK, _CHUNK)
        d_blk = delta_s[pl.ds(t0, _CHUNK), :]               # (8, d_in)
        u_blk = xs_s[pl.ds(t0, _CHUNK), :]                  # (8, d_in)
        b_blk = bm_s[pl.ds(t0, _CHUNK), :]                  # (8, d_state)
        c_blk = cm_s[pl.ds(t0, _CHUNK), :]                  # (8, d_state)
        a_t = neg_a_t_ref[...]                              # (d_state, d_in)
        dA = jnp.exp(d_blk[:, None, :] * a_t[None, :, :])   # one EUP pass per chunk
        dBu = (d_blk * u_blk)[:, None, :] * b_blk[:, :, None]
        states = []
        for t in range(_CHUNK):                              # short static unroll
            state = dA[t] * state + dBu[t]
            states.append(state)
        st = jnp.stack(states, axis=0)                       # (8, d_state, d_in)
        # one batched C-weighted reduce + one aligned 8-row slab store per chunk
        ys_s[pl.ds(t0, _CHUNK), :] = jnp.sum(st * c_blk[:, :, None], axis=1)
        return state

    state = lax.fori_loop(0, Lt // _CHUNK, chunk_body, state_s[...])
    state_s[...] = state                                     # hand off to next tile

    # ---- skip term, gating, fused out_proj (lane-dense padded output columns)
    y = (ys_s[...] + xs_s[...] * d_ref[...]) * res_s[...]
    out_ref[0] = jnp.dot(y.astype(jnp.bfloat16), w_out_ref[...],
                         preferred_element_type=jnp.float32)


def mamba_block_pallas(x, p, l_tile=256):
    """x: (B, L, d_model) f32.  Returns (B, L, d_model) f32."""
    B, L, d_model = x.shape
    d_inner = p['W_in_x'].shape[1]
    d_state = p['A_log'].shape[1]
    d_conv = p['conv_w'].shape[0]

    d_in_p = _round_up(d_inner, _LANE)           # lane-padded inner width
    d_out_p = _round_up(d_model, _LANE)          # lane-dense output width
    pad_i = d_in_p - d_inner

    # sequence tile (multiple of the scan chunk); pad L to a multiple of it.
    # Causal model => end padding cannot affect the first L outputs.
    Lt = max(_CHUNK, (min(l_tile, _round_up(L, _CHUNK)) // _CHUNK) * _CHUNK)
    Lp = _round_up(L, Lt)
    x_p = x if Lp == L else jnp.pad(x, ((0, 0), (0, Lp - L), (0, 0)))
    x_p = x_p.astype(jnp.bfloat16)               # MXU operand dtype; halves HBM traffic

    def pad_cols(w, n, value=0.0):
        return jnp.pad(w, ((0, 0), (0, n)), constant_values=value)

    # fused / lane-padded weights; MXU operands bf16, elementwise params f32
    w_in = jnp.concatenate([pad_cols(p['W_in_x'], pad_i),
                            pad_cols(p['W_in_res'], pad_i)],
                           axis=1).astype(jnp.bfloat16)          # (d_model, 2*d_in_p)
    conv_w = pad_cols(p['conv_w'], pad_i)                        # (d_conv, d_in_p)
    conv_b = pad_cols(p['conv_b'], pad_i)
    b_dt = pad_cols(p['b_dt'], pad_i)
    d_skip = pad_cols(p['D'], pad_i)
    # fold dt_proj into x_proj (exact low-rank product; removes a K=dt_rank sliver matmul)
    w_dd = jnp.pad(jnp.dot(p['W_delta'], p['W_dt'], precision=lax.Precision.HIGHEST),
                   ((0, pad_i), (0, pad_i)))
    w_b = jnp.pad(p['W_B'], ((0, pad_i), (0, 0)))
    w_c = jnp.pad(p['W_C'], ((0, pad_i), (0, 0)))
    w_x = jnp.concatenate([w_dd, w_b, w_c], axis=1).astype(jnp.bfloat16)
    neg_a_t = jnp.pad(-jnp.exp(p['A_log']).T, ((0, 0), (0, pad_i)),
                      constant_values=-1.0)                      # (d_state, d_in_p)
    w_out = jnp.pad(p['W_out'],
                    ((0, pad_i), (0, d_out_p - d_model))).astype(jnp.bfloat16)

    weights = [w_in, conv_w, conv_b, w_x, b_dt, neg_a_t, d_skip, w_out]
    # whole-array, single-buffered, VMEM-resident weights (no pipeline double buffers)
    vmem_spec = pl.BlockSpec(memory_space=pltpu.MemorySpace.VMEM)

    grid_spec = pltpu.PrefetchScalarGridSpec(
        num_scalar_prefetch=0,
        grid=(B, Lp // Lt),
        in_specs=[pl.BlockSpec((1, Lt, d_model), lambda b, l: (b, l, 0))]
                 + [vmem_spec] * len(weights),
        out_specs=pl.BlockSpec((1, Lt, d_out_p), lambda b, l: (b, l, 0)),
        scratch_shapes=[
            pltpu.VMEM((Lt + 8, d_in_p), jnp.float32),      # xe: conv tail rows + xi
            pltpu.VMEM((Lt, d_in_p), jnp.float32),          # xs (also u for the scan)
            pltpu.VMEM((Lt, d_in_p), jnp.float32),          # silu(res) gate
            pltpu.VMEM((Lt, d_in_p), jnp.float32),          # delta
            pltpu.VMEM((Lt, d_state), jnp.float32),         # B
            pltpu.VMEM((Lt, d_state), jnp.float32),         # C
            pltpu.VMEM((Lt, d_in_p), jnp.float32),          # ys
            pltpu.VMEM((d_state, d_in_p), jnp.float32),     # carried scan state
            pltpu.VMEM((d_conv - 1, d_in_p), jnp.float32),  # carried conv tail
        ],
    )
    out = pl.pallas_call(
        _mamba_kernel,
        out_shape=jax.ShapeDtypeStruct((B, Lp, d_out_p), jnp.float32),
        grid_spec=grid_spec,
        compiler_params=pltpu.CompilerParams(
            dimension_semantics=("parallel", "arbitrary"),
            # <= v7x physical VMEM; on v5e/v6e (128 MiB) l_tile and this limit can
            # both be raised ~2x for better DMA amortization.
            vmem_limit_bytes=64 * 1024 * 1024),
    )(x_p, *weights)
    return out[:, :L, :d_model]


def init_params(key, d_model, d_inner, d_state, dt_rank, d_conv):
    ks = jax.random.split(key, 8)
    sc = 0.1
    p = {}
    p['W_in_x'] = jax.random.normal(ks[0], (d_model, d_inner), jnp.float32) * sc
    p['W_in_res'] = jax.random.normal(ks[1], (d_model, d_inner), jnp.float32) * sc
    p['conv_w'] = jax.random.normal(ks[2], (d_conv, d_inner), jnp.float32) * sc  # (tap, chan)
    p['conv_b'] = jax.random.normal(ks[3], (1, d_inner), jnp.float32) * sc
    W_x = jax.random.normal(ks[4], (d_inner, dt_rank + 2 * d_state), jnp.float32) * sc
    p['W_delta'] = W_x[:, :dt_rank]
    p['W_B'] = W_x[:, dt_rank:dt_rank + d_state]
    p['W_C'] = W_x[:, dt_rank + d_state:]
    p['W_dt'] = jax.random.normal(ks[5], (dt_rank, d_inner), jnp.float32) * sc
    p['b_dt'] = jax.random.normal(ks[6], (1, d_inner), jnp.float32) * sc
    p['A_log'] = jnp.log(jnp.broadcast_to(
        jnp.arange(1, d_state + 1, dtype=jnp.float32), (d_inner, d_state)))
    p['D'] = jnp.ones((1, d_inner), jnp.float32)
    p['W_out'] = jax.random.normal(ks[7], (d_inner, d_model), jnp.float32) * sc
    return p


def ref_forward(x, p, matmul_dtype=jnp.float32):
    """Pure-JAX reference mirroring the PyTorch forward semantics.

    With matmul_dtype=bfloat16 the matmul operands are rounded like the Pallas
    kernel's MXU inputs (f32 accumulation), giving a tight comparison.
    """
    B, L, _ = x.shape
    K = p['conv_w'].shape[0]

    def mm(a, w):
        return jnp.dot(a.astype(matmul_dtype), w.astype(matmul_dtype),
                       preferred_element_type=jnp.float32)

    xi = mm(x, p['W_in_x'])
    res = mm(x, p['W_in_res'])

    xpad = jnp.pad(xi, ((0, 0), (K - 1, 0), (0, 0)))
    conv = jnp.zeros_like(xi)
    for k in range(K):
        conv = conv + xpad[:, k:k + L, :] * p['conv_w'][k][None, None, :]
    conv = conv + p['conv_b'][None]
    xs = _silu_ref(conv)

    delta = _softplus(mm(mm(xs, p['W_delta']), p['W_dt']) + p['b_dt'][None])
    Bm = mm(xs, p['W_B'])
    Cm = mm(xs, p['W_C'])

    A = -jnp.exp(p['A_log'])
    deltaA = jnp.exp(delta[..., None] * A[None, None, :, :])
    dBu = delta[..., None] * Bm[:, :, None, :] * xs[..., None]

    state = jnp.zeros((B, xi.shape[-1], A.shape[1]), jnp.float32)
    ys = []
    for i in range(L):
        state = deltaA[:, i] * state + dBu[:, i]
        ys.append(jnp.sum(state * Cm[:, i, None, :], axis=-1))
    y = jnp.stack(ys, axis=1)
    y = y + xs * p['D'][None]
    y = y * _silu_ref(res)
    return mm(y, p['W_out'])


if __name__ == "__main__":
    # ModelArgs equivalent (small): d_model=32, expand=2 -> d_inner=64,
    # dt_rank=ceil(32/16)=2, d_state=16, d_conv=4.
    # L=24 with l_tile=16 exercises multi-tile scan-state / conv-tail carry and
    # end-of-sequence padding.
    d_model, expand, d_state, d_conv = 32, 2, 16, 4
    d_inner = expand * d_model
    dt_rank = math.ceil(d_model / 16)
    B, L = 2, 24

    key = jax.random.PRNGKey(0)
    kx, kp = jax.random.split(key)
    x = jax.random.normal(kx, (B, L, d_model), jnp.float32)
    params = init_params(kp, d_model, d_inner, d_state, dt_rank, d_conv)

    out = jax.block_until_ready(mamba_block_pallas(x, params, l_tile=16))
    assert out.shape == (B, L, d_model)

    ref_matched = ref_forward(x, params, matmul_dtype=jnp.bfloat16)  # MXU-matched dtype
    ref_f32 = ref_forward(x, params, matmul_dtype=jnp.float32)
    err_matched = float(jnp.max(jnp.abs(out - ref_matched)))
    err_f32 = float(jnp.max(jnp.abs(out - ref_f32)))
    assert err_matched < 5e-3, f"Pallas kernel disagrees with bf16-matched reference: {err_matched}"
    assert err_f32 < 3e-2, f"Pallas kernel disagrees with f32 reference: {err_f32}"
    print("KERNEL_OK")
</pallas_src>

<mosaic_0001>
module attributes {stable_mosaic.version = 11 : i64} {
  func.func @_mamba_kernel(%arg0: i32, %arg1: i32, %arg2: memref<1x16x32xbf16, #tpu.memory_space<vmem>>, %arg3: memref<32x256xbf16, #tpu.memory_space<vmem>>, %arg4: memref<4x128xf32, #tpu.memory_space<vmem>>, %arg5: memref<1x128xf32, #tpu.memory_space<vmem>>, %arg6: memref<128x160xbf16, #tpu.memory_space<vmem>>, %arg7: memref<1x128xf32, #tpu.memory_space<vmem>>, %arg8: memref<16x128xf32, #tpu.memory_space<vmem>>, %arg9: memref<1x128xf32, #tpu.memory_space<vmem>>, %arg10: memref<128x128xbf16, #tpu.memory_space<vmem>>, %arg11: memref<1x16x128xf32, #tpu.memory_space<vmem>>, %arg12: memref<24x128xf32, #tpu.memory_space<vmem>>, %arg13: memref<16x128xf32, #tpu.memory_space<vmem>>, %arg14: memref<16x128xf32, #tpu.memory_space<vmem>>, %arg15: memref<16x128xf32, #tpu.memory_space<vmem>>, %arg16: memref<16x16xf32, #tpu.memory_space<vmem>>, %arg17: memref<16x16xf32, #tpu.memory_space<vmem>>, %arg18: memref<16x128xf32, #tpu.memory_space<vmem>>, %arg19: memref<16x128xf32, #tpu.memory_space<vmem>>, %arg20: memref<3x128xf32, #tpu.memory_space<vmem>>) attributes {dimension_semantics = [#tpu.dimension_semantics<parallel>, #tpu.dimension_semantics<arbitrary>], iteration_bounds = array<i64: 2, 2>, scalar_prefetch = 0 : i64, scratch_operands = 9 : i64, tpu.core_type = #tpu.core_type<tc>, window_params = [{transform_indices = @transform_0, window_bounds = array<i64: 1, 16, 32>}, {pipeline_mode = #tpu.pipeline_mode<synchronous>, transform_indices = @transform_1, window_bounds = array<i64: 32, 256>}, {pipeline_mode = #tpu.pipeline_mode<synchronous>, transform_indices = @transform_2, window_bounds = array<i64: 4, 128>}, {pipeline_mode = #tpu.pipeline_mode<synchronous>, transform_indices = @transform_3, window_bounds = array<i64: 1, 128>}, {pipeline_mode = #tpu.pipeline_mode<synchronous>, transform_indices = @transform_4, window_bounds = array<i64: 128, 160>}, {pipeline_mode = #tpu.pipeline_mode<synchronous>, transform_indices = @transform_5, window_bounds = array<i64: 1, 128>}, {pipeline_mode = #tpu.pipeline_mode<synchronous>, transform_indices = @transform_6, window_bounds = array<i64: 16, 128>}, {pipeline_mode = #tpu.pipeline_mode<synchronous>, transform_indices = @transform_7, window_bounds = array<i64: 1, 128>}, {pipeline_mode = #tpu.pipeline_mode<synchronous>, transform_indices = @transform_8, window_bounds = array<i64: 128, 128>}, {transform_indices = @transform_9, window_bounds = array<i64: 1, 16, 128>}]} {
    %c0_i32 = arith.constant 0 : i32
    %0 = arith.cmpi eq, %arg1, %c0_i32 : i32
    %1 = arith.extui %0 : i1 to i32
    %c0_i32_0 = arith.constant 0 : i32
    %2 = arith.cmpi ne, %1, %c0_i32_0 : i32
    scf.if %2 {
      %cst_61 = arith.constant 0.000000e+00 : f32
      %90 = vector.broadcast %cst_61 : f32 to vector<16x128xf32>
      %c0_62 = arith.constant 0 : index
      %c0_63 = arith.constant 0 : index
      %91 = vector.load %arg19[%c0_62, %c0_63] : memref<16x128xf32, #tpu.memory_space<vmem>>, vector<16x128xf32>
      tpu.vector_store %arg19[%c0_62, %c0_63], %90 {strides = array<i32>} : memref<16x128xf32, #tpu.memory_space<vmem>>, vector<16x128xf32>,
      %cst_64 = arith.constant 0.000000e+00 : f32
      %92 = vector.broadcast %cst_64 : f32 to vector<3x128xf32>
      %c0_65 = arith.constant 0 : index
      %c0_66 = arith.constant 0 : index
      %93 = vector.load %arg20[%c0_65, %c0_66] : memref<3x128xf32, #tpu.memory_space<vmem>>, vector<3x128xf32>
      tpu.vector_store %arg20[%c0_65, %c0_66], %92 {strides = array<i32>} : memref<3x128xf32, #tpu.memory_space<vmem>>, vector<3x128xf32>,
    } else {
    }
    %c0 = arith.constant 0 : index
    %c0_1 = arith.constant 0 : index
    %c0_2 = arith.constant 0 : index
    %3 = vector.load %arg2[%c0, %c0_1, %c0_2] : memref<1x16x32xbf16, #tpu.memory_space<vmem>>, vector<1x16x32xbf16>
    %4 = vector.shape_cast %3 : vector<1x16x32xbf16> to vector<16x32xbf16>
    %c0_3 = arith.constant 0 : index
    %c0_4 = arith.constant 0 : index
    %5 = vector.load %arg3[%c0_3, %c0_4] : memref<32x256xbf16, #tpu.memory_space<vmem>>, vector<32x256xbf16>
    %cst = arith.constant dense<0.000000e+00> : vector<16x256xf32>
    %6 = tpu.matmul %4, %5, %cst {dimension_numbers = #tpu.dot_dimension_numbers<[1], [0], [0], [1], [0, 0, 1, 1], [], []>} : vector<16x32xbf16>, vector<32x256xbf16>, vector<16x256xf32> -> vector<16x256xf32>
    %7 = vector.extract_strided_slice %6 {offsets = [0, 0], sizes = [16, 128], strides = [1, 1]} : vector<16x256xf32> to vector<16x128xf32>
    %8 = vector.extract_strided_slice %6 {offsets = [0, 128], sizes = [16, 128], strides = [1, 1]} : vector<16x256xf32> to vector<16x128xf32>
    %cst_5 = arith.constant 0.000000e+00 : f32
    %9 = vector.broadcast %cst_5 : f32 to vector<16x128xf32>
    %10 = arith.subf %9, %8 : vector<16x128xf32>
    %11 = math.exp %10 : vector<16x128xf32>
    %cst_6 = arith.constant 1.000000e+00 : f32
    %12 = vector.broadcast %cst_6 : f32 to vector<16x128xf32>
    %13 = arith.addf %12, %11 : vector<16x128xf32>
    %14 = tpu.reciprocal %13 {approx = true} : vector<16x128xf32> -> vector<16x128xf32>
    %15 = arith.mulf %8, %14 : vector<16x128xf32>
    %c0_7 = arith.constant 0 : index
    %c0_8 = arith.constant 0 : index
    %16 = vector.load %arg14[%c0_7, %c0_8] : memref<16x128xf32, #tpu.memory_space<vmem>>, vector<16x128xf32>
    tpu.vector_store %arg14[%c0_7, %c0_8], %15 {strides = array<i32>} : memref<16x128xf32, #tpu.memory_space<vmem>>, vector<16x128xf32>,
    %c0_9 = arith.constant 0 : index
    %c0_10 = arith.constant 0 : index
    %17 = vector.load %arg20[%c0_9, %c0_10] : memref<3x128xf32, #tpu.memory_space<vmem>>, vector<3x128xf32>
    %c5 = arith.constant 5 : index
    %c0_11 = arith.constant 0 : index
    %18 = vector.load %arg12[%c5, %c0_11] : memref<24x128xf32, #tpu.memory_space<vmem>>, vector<3x128xf32>
    tpu.vector_store %arg12[%c5, %c0_11], %17 {strides = array<i32>} : memref<24x128xf32, #tpu.memory_space<vmem>>, vector<3x128xf32>,
    %c8 = arith.constant 8 : index
    %c0_12 = arith.constant 0 : index
    %19 = vector.load %arg12[%c8, %c0_12] : memref<24x128xf32, #tpu.memory_space<vmem>>, vector<16x128xf32>
    tpu.vector_store %arg12[%c8, %c0_12], %7 {strides = array<i32>} : memref<24x128xf32, #tpu.memory_space<vmem>>, vector<16x128xf32>,
    %c21 = arith.constant 21 : index
    %c0_13 = arith.constant 0 : index
    %20 = vector.load %arg12[%c21, %c0_13] : memref<24x128xf32, #tpu.memory_space<vmem>>, vector<3x128xf32>
    %c0_14 = arith.constant 0 : index
    %c0_15 = arith.constant 0 : index
    %21 = vector.load %arg20[%c0_14, %c0_15] : memref<3x128xf32, #tpu.memory_space<vmem>>, vector<3x128xf32>
    tpu.vector_store %arg20[%c0_14, %c0_15], %20 {strides = array<i32>} : memref<3x128xf32, #tpu.memory_space<vmem>>, vector<3x128xf32>,
    %c0_16 = arith.constant 0 : index
    %c0_17 = arith.constant 0 : index
    %22 = vector.load %arg4[%c0_16, %c0_17] : memref<4x128xf32, #tpu.memory_space<vmem>>, vector<4x128xf32>
    %23 = vector.extract_strided_slice %22 {offsets = [3, 0], sizes = [1, 128], strides = [1, 1]} : vector<4x128xf32> to vector<1x128xf32>
    %24 = vector.broadcast %23 : vector<1x128xf32> to vector<16x128xf32>
    %25 = arith.mulf %7, %24 : vector<16x128xf32>
    %c7 = arith.constant 7 : index
    %c0_18 = arith.constant 0 : index
    %26 = vector.load %arg12[%c7, %c0_18] : memref<24x128xf32, #tpu.memory_space<vmem>>, vector<16x128xf32>
    %27 = vector.extract_strided_slice %22 {offsets = [2, 0], sizes = [1, 128], strides = [1, 1]} : vector<4x128xf32> to vector<1x128xf32>
    %28 = vector.broadcast %27 : vector<1x128xf32> to vector<16x128xf32>
    %29 = arith.mulf %26, %28 : vector<16x128xf32>
    %30 = arith.addf %25, %29 : vector<16x128xf32>
    %c6 = arith.constant 6 : index
    %c0_19 = arith.constant 0 : index
    %31 = vector.load %arg12[%c6, %c0_19] : memref<24x128xf32, #tpu.memory_space<vmem>>, vector<16x128xf32>
    %32 = vector.extract_strided_slice %22 {offsets = [1, 0], sizes = [1, 128], strides = [1, 1]} : vector<4x128xf32> to vector<1x128xf32>
    %33 = vector.broadcast %32 : vector<1x128xf32> to vector<16x128xf32>
    %34 = arith.mulf %31, %33 : vector<16x128xf32>
    %35 = arith.addf %30, %34 : vector<16x128xf32>
    %c5_20 = arith.constant 5 : index
    %c0_21 = arith.constant 0 : index
    %36 = vector.load %arg12[%c5_20, %c0_21] : memref<24x128xf32, #tpu.memory_space<vmem>>, vector<16x128xf32>
    %37 = vector.extract_strided_slice %22 {offsets = [0, 0], sizes = [1, 128], strides = [1, 1]} : vector<4x128xf32> to vector<1x128xf32>
    %38 = vector.broadcast %37 : vector<1x128xf32> to vector<16x128xf32>
    %39 = arith.mulf %36, %38 : vector<16x128xf32>
    %40 = arith.addf %35, %39 : vector<16x128xf32>
    %c0_22 = arith.constant 0 : index
    %c0_23 = arith.constant 0 : index
    %41 = vector.load %arg5[%c0_22, %c0_23] : memref<1x128xf32, #tpu.memory_space<vmem>>, vector<1x128xf32>
    %42 = vector.broadcast %41 : vector<1x128xf32> to vector<16x128xf32>
    %43 = arith.addf %40, %42 : vector<16x128xf32>
    %cst_24 = arith.constant 0.000000e+00 : f32
    %44 = vector.broadcast %cst_24 : f32 to vector<16x128xf32>
    %45 = arith.subf %44, %43 : vector<16x128xf32>
    %46 = math.exp %45 : vector<16x128xf32>
    %cst_25 = arith.constant 1.000000e+00 : f32
    %47 = vector.broadcast %cst_25 : f32 to vector<16x128xf32>
    %48 = arith.addf %47, %46 : vector<16x128xf32>
    %49 = tpu.reciprocal %48 {approx = true} : vector<16x128xf32> -> vector<16x128xf32>
    %50 = arith.mulf %43, %49 : vector<16x128xf32>
    %c0_26 = arith.constant 0 : index
    %c0_27 = arith.constant 0 : index
    %51 = vector.load %arg13[%c0_26, %c0_27] : memref<16x128xf32, #tpu.memory_space<vmem>>, vector<16x128xf32>
    tpu.vector_store %arg13[%c0_26, %c0_27], %50 {strides = array<i32>} : memref<16x128xf32, #tpu.memory_space<vmem>>, vector<16x128xf32>,
    %52 = arith.truncf %50 : vector<16x128xf32> to vector<16x128xbf16>
    %c0_28 = arith.constant 0 : index
    %c0_29 = arith.constant 0 : index
    %53 = vector.load %arg6[%c0_28, %c0_29] : memref<128x160xbf16, #tpu.memory_space<vmem>>, vector<128x160xbf16>
    %cst_30 = arith.constant dense<0.000000e+00> : vector<16x160xf32>
    %54 = tpu.matmul %52, %53, %cst_30 {dimension_numbers = #tpu.dot_dimension_numbers<[1], [0], [0], [1], [0, 0, 1, 1], [], []>} : vector<16x128xbf16>, vector<128x160xbf16>, vector<16x160xf32> -> vector<16x160xf32>
    %55 = vector.extract_strided_slice %54 {offsets = [0, 0], sizes = [16, 128], strides = [1, 1]} : vector<16x160xf32> to vector<16x128xf32>
    %c0_31 = arith.constant 0 : index
    %c0_32 = arith.constant 0 : index
    %56 = vector.load %arg7[%c0_31, %c0_32] : memref<1x128xf32, #tpu.memory_space<vmem>>, vector<1x128xf32>
    %57 = vector.broadcast %56 : vector<1x128xf32> to vector<16x128xf32>
    %58 = arith.addf %55, %57 : vector<16x128xf32>
    %cst_33 = arith.constant 0.000000e+00 : f32
    %59 = vector.broadcast %cst_33 : f32 to vector<16x128xf32>
    %60 = arith.maximumf %58, %59 : vector<16x128xf32>
    %61 = math.absf %58 : vector<16x128xf32>
    %cst_34 = arith.constant 0.000000e+00 : f32
    %62 = vector.broadcast %cst_34 : f32 to vector<16x128xf32>
    %63 = arith.subf %62, %61 : vector<16x128xf32>
    %64 = math.exp %63 : vector<16x128xf32>
    %65 = math.log1p %64 : vector<16x128xf32>
    %66 = arith.addf %60, %65 : vector<16x128xf32>
    %c0_35 = arith.constant 0 : index
    %c0_36 = arith.constant 0 : index
    %67 = vector.load %arg15[%c0_35, %c0_36] : memref<16x128xf32, #tpu.memory_space<vmem>>, vector<16x128xf32>
    tpu.vector_store %arg15[%c0_35, %c0_36], %66 {strides = array<i32>} : memref<16x128xf32, #tpu.memory_space<vmem>>, vector<16x128xf32>,
    %68 = vector.extract_strided_slice %54 {offsets = [0, 128], sizes = [16, 16], strides = [1, 1]} : vector<16x160xf32> to vector<16x16xf32>
    %c0_37 = arith.constant 0 : index
    %c0_38 = arith.constant 0 : index
    %69 = vector.load %arg16[%c0_37, %c0_38] : memref<16x16xf32, #tpu.memory_space<vmem>>, vector<16x16xf32>
    tpu.vector_store %arg16[%c0_37, %c0_38], %68 {strides = array<i32>} : memref<16x16xf32, #tpu.memory_space<vmem>>, vector<16x16xf32>,
    %70 = vector.extract_strided_slice %54 {offsets = [0, 144], sizes = [16, 16], strides = [1, 1]} : vector<16x160xf32> to vector<16x16xf32>
    %c0_39 = arith.constant 0 : index
    %c0_40 = arith.constant 0 : index
    %71 = vector.load %arg17[%c0_39, %c0_40] : memref<16x16xf32, #tpu.memory_space<vmem>>, vector<16x16xf32>
    tpu.vector_store %arg17[%c0_39, %c0_40], %70 {strides = array<i32>} : memref<16x16xf32, #tpu.memory_space<vmem>>, vector<16x16xf32>,
    %c0_41 = arith.constant 0 : index
    %c0_42 = arith.constant 0 : index
    %72 = vector.load %arg19[%c0_41, %c0_42] : memref<16x128xf32, #tpu.memory_space<vmem>>, vector<16x128xf32>
    %c0_i32_43 = arith.constant 0 : i32
    %c2_i32 = arith.constant 2 : i32
    %73 = arith.addi %c0_i32_43, %c2_i32 : i32
    %c1_i32 = arith.constant 1 : i32
    %74 = scf.for %arg21 = %c0_i32_43 to %73 step %c1_i32 iter_args(%arg22 = %72) -> (vector<16x128xf32>)  : i32 {
      %c8_i32 = arith.constant 8 : i32
      %90 = arith.muli %arg21, %c8_i32 : i32
      %91 = tpu.assume_multiple %90, 8 : i32
      %92 = arith.index_cast %91 : i32 to index
      %c0_61 = arith.constant 0 : index
      %93 = vector.load %arg15[%92, %c0_61] : memref<16x128xf32, #tpu.memory_space<vmem>>, vector<8x128xf32>
      %94 = arith.index_cast %91 : i32 to index
      %c0_62 = arith.constant 0 : index
      %95 = vector.load %arg13[%94, %c0_62] : memref<16x128xf32, #tpu.memory_space<vmem>>, vector<8x128xf32>
      %96 = arith.index_cast %91 : i32 to index
      %c0_63 = arith.constant 0 : index
      %97 = vector.load %arg16[%96, %c0_63] : memref<16x16xf32, #tpu.memory_space<vmem>>, vector<8x16xf32>
      %98 = arith.index_cast %91 : i32 to index
      %c0_64 = arith.constant 0 : index
      %99 = vector.load %arg17[%98, %c0_64] : memref<16x16xf32, #tpu.memory_space<vmem>>, vector<8x16xf32>
      %c0_65 = arith.constant 0 : index
      %c0_66 = arith.constant 0 : index
      %100 = vector.load %arg8[%c0_65, %c0_66] : memref<16x128xf32, #tpu.memory_space<vmem>>, vector<16x128xf32>
      %101 = vector.shape_cast %93 : vector<8x128xf32> to vector<8x1x128xf32>
      %102 = vector.shape_cast %100 : vector<16x128xf32> to vector<1x16x128xf32>
      %103 = vector.broadcast %101 : vector<8x1x128xf32> to vector<8x16x128xf32>
      %104 = vector.broadcast %102 : vector<1x16x128xf32> to vector<8x16x128xf32>
      %105 = arith.mulf %103, %104 : vector<8x16x128xf32>
      %106 = math.exp %105 : vector<8x16x128xf32>
      %107 = arith.mulf %93, %95 : vector<8x128xf32>
      %108 = vector.shape_cast %107 : vector<8x128xf32> to vector<8x1x128xf32>
      %109 = vector.shape_cast %97 : vector<8x16xf32> to vector<8x16x1xf32>
      %110 = vector.broadcast %108 : vector<8x1x128xf32> to vector<8x16x128xf32>
      %111 = vector.broadcast %109 : vector<8x16x1xf32> to vector<8x16x128xf32>
      %112 = arith.mulf %110, %111 : vector<8x16x128xf32>
      %113 = vector.extract_strided_slice %106 {offsets = [0, 0, 0], sizes = [1, 16, 128], strides = [1, 1, 1]} : vector<8x16x128xf32> to vector<1x16x128xf32>
      %114 = vector.shape_cast %113 : vector<1x16x128xf32> to vector<16x128xf32>
      %115 = arith.mulf %114, %arg22 : vector<16x128xf32>
      %116 = vector.extract_strided_slice %112 {offsets = [0, 0, 0], sizes = [1, 16, 128], strides = [1, 1, 1]} : vector<8x16x128xf32> to vector<1x16x128xf32>
      %117 = vector.shape_cast %116 : vector<1x16x128xf32> to vector<16x128xf32>
      %118 = arith.addf %115, %117 : vector<16x128xf32>
      %119 = vector.extract_strided_slice %106 {offsets = [1, 0, 0], sizes = [1, 16, 128], strides = [1, 1, 1]} : vector<8x16x128xf32> to vector<1x16x128xf32>
      %120 = vector.shape_cast %119 : vector<1x16x128xf32> to vector<16x128xf32>
      %121 = arith.mulf %120, %118 : vector<16x128xf32>
      %122 = vector.extract_strided_slice %112 {offsets = [1, 0, 0], sizes = [1, 16, 128], strides = [1, 1, 1]} : vector<8x16x128xf32> to vector<1x16x128xf32>
      %123 = vector.shape_cast %122 : vector<1x16x128xf32> to vector<16x128xf32>
      %124 = arith.addf %121, %123 : vector<16x128xf32>
      %125 = vector.extract_strided_slice %106 {offsets = [2, 0, 0], sizes = [1, 16, 128], strides = [1, 1, 1]} : vector<8x16x128xf32> to vector<1x16x128xf32>
      %126 = vector.shape_cast %125 : vector<1x16x128xf32> to vector<16x128xf32>
      %127 = arith.mulf %126, %124 : vector<16x128xf32>
      %128 = vector.extract_strided_slice %112 {offsets = [2, 0, 0], sizes = [1, 16, 128], strides = [1, 1, 1]} : vector<8x16x128xf32> to vector<1x16x128xf32>
      %129 = vector.shape_cast %128 : vector<1x16x128xf32> to vector<16x128xf32>
      %130 = arith.addf %127, %129 : vector<16x128xf32>
      %131 = vector.extract_strided_slice %106 {offsets = [3, 0, 0], sizes = [1, 16, 128], strides = [1, 1, 1]} : vector<8x16x128xf32> to vector<1x16x128xf32>
      %132 = vector.shape_cast %131 : vector<1x16x128xf32> to vector<16x128xf32>
      %133 = arith.mulf %132, %130 : vector<16x128xf32>
      %134 = vector.extract_strided_slice %112 {offsets = [3, 0, 0], sizes = [1, 16, 128], strides = [1, 1, 1]} : vector<8x16x128xf32> to vector<1x16x128xf32>
      %135 = vector.shape_cast %134 : vector<1x16x128xf32> to vector<16x128xf32>
      %136 = arith.addf %133, %135 : vector<16x128xf32>
      %137 = vector.extract_strided_slice %106 {offsets = [4, 0, 0], sizes = [1, 16, 128], strides = [1, 1, 1]} : vector<8x16x128xf32> to vector<1x16x128xf32>
      %138 = vector.shape_cast %137 : vector<1x16x128xf32> to vector<16x128xf32>
      %139 = arith.mulf %138, %136 : vector<16x128xf32>
      %140 = vector.extract_strided_slice %112 {offsets = [4, 0, 0], sizes = [1, 16, 128], strides = [1, 1, 1]} : vector<8x16x128xf32> to vector<1x16x128xf32>
      %141 = vector.shape_cast %140 : vector<1x16x128xf32> to vector<16x128xf32>
      %142 = arith.addf %139, %141 : vector<16x128xf32>
      %143 = vector.extract_strided_slice %106 {offsets = [5, 0, 0], sizes = [1, 16, 128], strides = [1, 1, 1]} : vector<8x16x128xf32> to vector<1x16x128xf32>
      %144 = vector.shape_cast %143 : vector<1x16x128xf32> to vector<16x128xf32>
      %145 = arith.mulf %144, %142 : vector<16x128xf32>
      %146 = vector.extract_strided_slice %112 {offsets = [5, 0, 0], sizes = [1, 16, 128], strides = [1, 1, 1]} : vector<8x16x128xf32> to vector<1x16x128xf32>
      %147 = vector.shape_cast %146 : vector<1x16x128xf32> to vector<16x128xf32>
      %148 = arith.addf %145, %147 : vector<16x128xf32>
      %149 = vector.extract_strided_slice %106 {offsets = [6, 0, 0], sizes = [1, 16, 128], strides = [1, 1, 1]} : vector<8x16x128xf32> to vector<1x16x128xf32>
      %150 = vector.shape_cast %149 : vector<1x16x128xf32> to vector<16x128xf32>
      %151 = arith.mulf %150, %148 : vector<16x128xf32>
      %152 = vector.extract_strided_slice %112 {offsets = [6, 0, 0], sizes = [1, 16, 128], strides = [1, 1, 1]} : vector<8x16x128xf32> to vector<1x16x128xf32>
      %153 = vector.shape_cast %152 : vector<1x16x128xf32> to vector<16x128xf32>
      %154 = arith.addf %151, %153 : vector<16x128xf32>
      %155 = vector.extract_strided_slice %106 {offsets = [7, 0, 0], sizes = [1, 16, 128], strides = [1, 1, 1]} : vector<8x16x128xf32> to vector<1x16x128xf32>
      %156 = vector.shape_cast %155 : vector<1x16x128xf32> to vector<16x128xf32>
      %157 = arith.mulf %156, %154 : vector<16x128xf32>
      %158 = vector.extract_strided_slice %112 {offsets = [7, 0, 0], sizes = [1, 16, 128], strides = [1, 1, 1]} : vector<8x16x128xf32> to vector<1x16x128xf32>
      %159 = vector.shape_cast %158 : vector<1x16x128xf32> to vector<16x128xf32>
      %160 = arith.addf %157, %159 : vector<16x128xf32>
      %161 = vector.shape_cast %118 : vector<16x128xf32> to vector<1x16x128xf32>
      %162 = vector.shape_cast %124 : vector<16x128xf32> to vector<1x16x128xf32>
      %163 = vector.shape_cast %130 : vector<16x128xf32> to vector<1x16x128xf32>
      %164 = vector.shape_cast %136 : vector<16x128xf32> to vector<1x16x128xf32>
      %165 = vector.shape_cast %142 : vector<16x128xf32> to vector<1x16x128xf32>
      %166 = vector.shape_cast %148 : vector<16x128xf32> to vector<1x16x128xf32>
      %167 = vector.shape_cast %154 : vector<16x128xf32> to vector<1x16x128xf32>
      %168 = vector.shape_cast %160 : vector<16x128xf32> to vector<1x16x128xf32>
      %169 = tpu.concatenate %161, %162, %163, %164, %165, %166, %167, %168 in 0 : vector<1x16x128xf32>, vector<1x16x128xf32>, vector<1x16x128xf32>, vector<1x16x128xf32>, vector<1x16x128xf32>, vector<1x16x128xf32>, vector<1x16x128xf32>, vector<1x16x128xf32> -> vector<8x16x128xf32>
      %170 = vector.shape_cast %99 : vector<8x16xf32> to vector<8x16x1xf32>
      %171 = vector.broadcast %170 : vector<8x16x1xf32> to vector<8x16x128xf32>
      %172 = arith.mulf %169, %171 : vector<8x16x128xf32>
      %cst_67 = arith.constant dense<0.000000e+00> : vector<8x128xf32>
      %173 = vector.multi_reduction <add>, %172, %cst_67 [1] : vector<8x16x128xf32> to vector<8x128xf32>
      %174 = arith.index_cast %91 : i32 to index
      %c0_68 = arith.constant 0 : index
      %175 = vector.load %arg18[%174, %c0_68] : memref<16x128xf32, #tpu.memory_space<vmem>>, vector<8x128xf32>
      tpu.vector_store %arg18[%174, %c0_68], %173 {strides = array<i32>} : memref<16x128xf32, #tpu.memory_space<vmem>>, vector<8x128xf32>,
      scf.yield %160 : vector<16x128xf32>
    }
    %c2_i32_44 = arith.constant 2 : i32
    %c0_45 = arith.constant 0 : index
    %c0_46 = arith.constant 0 : index
    %75 = vector.load %arg19[%c0_45, %c0_46] : memref<16x128xf32, #tpu.memory_space<vmem>>, vector<16x128xf32>
    tpu.vector_store %arg19[%c0_45, %c0_46], %74 {strides = array<i32>} : memref<16x128xf32, #tpu.memory_space<vmem>>, vector<16x128xf32>,
    %c0_47 = arith.constant 0 : index
    %c0_48 = arith.constant 0 : index
    %76 = vector.load %arg18[%c0_47, %c0_48] : memref<16x128xf32, #tpu.memory_space<vmem>>, vector<16x128xf32>
    %c0_49 = arith.constant 0 : index
    %c0_50 = arith.constant 0 : index
    %77 = vector.load %arg13[%c0_49, %c0_50] : memref<16x128xf32, #tpu.memory_space<vmem>>, vector<16x128xf32>
    %c0_51 = arith.constant 0 : index
    %c0_52 = arith.constant 0 : index
    %78 = vector.load %arg9[%c0_51, %c0_52] : memref<1x128xf32, #tpu.memory_space<vmem>>, vector<1x128xf32>
    %79 = vector.broadcast %78 : vector<1x128xf32> to vector<16x128xf32>
    %80 = arith.mulf %77, %79 : vector<16x128xf32>
    %81 = arith.addf %76, %80 : vector<16x128xf32>
    %c0_53 = arith.constant 0 : index
    %c0_54 = arith.constant 0 : index
    %82 = vector.load %arg14[%c0_53, %c0_54] : memref<16x128xf32, #tpu.memory_space<vmem>>, vector<16x128xf32>
    %83 = arith.mulf %81, %82 : vector<16x128xf32>
    %84 = arith.truncf %83 : vector<16x128xf32> to vector<16x128xbf16>
    %c0_55 = arith.constant 0 : index
    %c0_56 = arith.constant 0 : index
    %85 = vector.load %arg10[%c0_55, %c0_56] : memref<128x128xbf16, #tpu.memory_space<vmem>>, vector<128x128xbf16>
    %cst_57 = arith.constant dense<0.000000e+00> : vector<16x128xf32>
    %86 = tpu.matmul %84, %85, %cst_57 {dimension_numbers = #tpu.dot_dimension_numbers<[1], [0], [0], [1], [0, 0, 1, 1], [], []>} : vector<16x128xbf16>, vector<128x128xbf16>, vector<16x128xf32> -> vector<16x128xf32>
    %c0_58 = arith.constant 0 : index
    %c0_59 = arith.constant 0 : index
    %c0_60 = arith.constant 0 : index
    %87 = vector.load %arg11[%c0_58, %c0_59, %c0_60] : memref<1x16x128xf32, #tpu.memory_space<vmem>>, vector<1x16x128xf32>
    %88 = vector.shape_cast %87 : vector<1x16x128xf32> to vector<16x128xf32>
    %89 = vector.shape_cast %86 : vector<16x128xf32> to vector<1x16x128xf32>
    tpu.vector_store %arg11[%c0_58, %c0_59, %c0_60], %89 {strides = array<i32>} : memref<1x16x128xf32, #tpu.memory_space<vmem>>, vector<1x16x128xf32>,
    return
  }
  func.func @transform_0(%arg0: i32, %arg1: i32) -> (i32, i32, i32) {
    %c0_i32 = arith.constant 0 : i32
    %c0_i32_0 = arith.constant 0 : i32
    return %arg0, %arg1, %c0_i32 : i32, i32, i32
  }
  func.func @transform_1(%arg0: i32, %arg1: i32) -> (i32, i32) {
    %c0_i32 = arith.constant 0 : i32
    %c0_i32_0 = arith.constant 0 : i32
    %c0_i32_1 = arith.constant 0 : i32
    return %c0_i32, %c0_i32_0 : i32, i32
  }
  func.func @transform_2(%arg0: i32, %arg1: i32) -> (i32, i32) {
    %c0_i32 = arith.constant 0 : i32
    %c0_i32_0 = arith.constant 0 : i32
    %c0_i32_1 = arith.constant 0 : i32
    return %c0_i32, %c0_i32_0 : i32, i32
  }
  func.func @transform_3(%arg0: i32, %arg1: i32) -> (i32, i32) {
    %c0_i32 = arith.constant 0 : i32
    %c0_i32_0 = arith.constant 0 : i32
    %c0_i32_1 = arith.constant 0 : i32
    return %c0_i32, %c0_i32_0 : i32, i32
  }
  func.func @transform_4(%arg0: i32, %arg1: i32) -> (i32, i32) {
    %c0_i32 = arith.constant 0 : i32
    %c0_i32_0 = arith.constant 0 : i32
    %c0_i32_1 = arith.constant 0 : i32
    return %c0_i32, %c0_i32_0 : i32, i32
  }
  func.func @transform_5(%arg0: i32, %arg1: i32) -> (i32, i32) {
    %c0_i32 = arith.constant 0 : i32
    %c0_i32_0 = arith.constant 0 : i32
    %c0_i32_1 = arith.constant 0 : i32
    return %c0_i32, %c0_i32_0 : i32, i32
  }
  func.func @transform_6(%arg0: i32, %arg1: i32) -> (i32, i32) {
    %c0_i32 = arith.constant 0 : i32
    %c0_i32_0 = arith.constant 0 : i32
    %c0_i32_1 = arith.constant 0 : i32
    return %c0_i32, %c0_i32_0 : i32, i32
  }
  func.func @transform_7(%arg0: i32, %arg1: i32) -> (i32, i32) {
    %c0_i32 = arith.constant 0 : i32
    %c0_i32_0 = arith.constant 0 : i32
    %c0_i32_1 = arith.constant 0 : i32
    return %c0_i32, %c0_i32_0 : i32, i32
  }
  func.func @transform_8(%arg0: i32, %arg1: i32) -> (i32, i32) {
    %c0_i32 = arith.constant 0 : i32
    %c0_i32_0 = arith.constant 0 : i32
    %c0_i32_1 = arith.constant 0 : i32
    return %c0_i32, %c0_i32_0 : i32, i32
  }
  func.func @transform_9(%arg0: i32, %arg1: i32) -> (i32, i32, i32) {
    %c0_i32 = arith.constant 0 : i32
    %c0_i32_0 = arith.constant 0 : i32
    return %arg0, %arg1, %c0_i32 : i32, i32, i32
  }
}

</mosaic_0001>

<bundles_post_ra>
// kernel: tpu_custom_call.1
= control target key start
LH: loop header
LB: loop body
LE: loop exit
PB: predicated region body
PF: predicated region fallthrough
CT: control target
= control target key end

     0   :  { %s3170_s0 = inlined_call_operand.hbm [shape: bf16[2,32,32], index: 0, kind: input, shape index: {}]   ;;  %s3171_s1 = inlined_call_operand.hbm [shape: bf16[32,256], index: 1, kind: input, shape index: {}]   ;;  %s3172_s2 = inlined_call_operand.hbm [shape: f32[4,128], index: 2, kind: input, shape index: {}]   ;;  %s3173_s3 = inlined_call_operand.hbm [shape: f32[1,128], index: 3, kind: input, shape index: {}]   ;;  %s3174_s4 = inlined_call_operand.hbm [shape: bf16[128,160], index: 4, kind: input, shape index: {}]   ;;  %s3175_s5 = inlined_call_operand.hbm [shape: f32[1,128], index: 5, kind: input, shape index: {}]   ;;  %s3176_s6 = inlined_call_operand.hbm [shape: f32[16,128], index: 6, kind: input, shape index: {}]   ;;  %s3177_s7 = inlined_call_operand.hbm [shape: f32[1,128], index: 7, kind: input, shape index: {}]   ;;  %s3178_s8 = inlined_call_operand.hbm [shape: bf16[128,128], index: 8, kind: input, shape index: {}]   ;;  %s3179_s9 = inlined_call_operand.hbm [shape: f32[2,32,128], index: 9, kind: output, shape index: {}]  }
   0x1   :  { %3192 = sst [smem:[#allocation36_spill]] %s3170_s0 }
   0x2   :  { %3193 = sst [smem:[#allocation37_spill]] %s3171_s1 }
   0x3   :  { %3194 = sst [smem:[#allocation38_spill]] %s3172_s2 }
   0x4   :  { %3195 = sst [smem:[#allocation39_spill]] %s3173_s3 }
   0x5   :  { %3196 = sst [smem:[#allocation40_spill]] %s3174_s4 }
   0x6   :  { %3197 = sst [smem:[#allocation41_spill]] %s3179_s9 }
   0x7   :  { %14 = vsyncpa [#allocation12], 0 }
   0x8   :  { %16 = vsyncpa [#allocation12 + $0x1], 0 }
   0x9   :  { %17 = vsyncpa [#allocation15], 0 }
   0xa   :  { %18 = vsyncpa [#allocation18], 0 }
   0xb   :  { %19 = vsyncpa [#allocation21], 0 }
   0xc   :  { %20 = vsyncpa [#allocation24], 0 }
   0xd   :  { %21 = vsyncpa [#allocation13], 0 }
   0xe   :  { %23 = vsyncpa [#allocation13 + $0x1], 0  ;;  %s2596_s30 = smov 0   ;;  %s2598_s10 = smov 0  }
   0xf   :  { %s2600_s11 = smov 0   ;;  %s2602_s12 = smov 0  }
  0x10   :  { %s2604_s13 = smov 0   ;;  %s2606_s14 = smov 0  }
  0x11   :  { %s2608_s15 = smov 0   ;;  %s2610_s16 = smov 0  }
  0x12 LB: > { %3198 = sst [smem:[#allocation33_spill]] %s2494_s12  ;;  %s3180_s17 = sadd.s32 4294967295, %s2510_s16   ;;  %s2510_s16 = sphi %s2610_s16, %s29_s16   ;;  %s2506_s15 = sphi %s2608_s15, %s3237_s15   ;;  %s2502_s14 = sphi %s2606_s14, %s3236_s14   ;;  %s2498_s13 = sphi %s2604_s13, %s3235_s13   ;;  %s2494_s12 = sphi %s2602_s12, %s3234_s12   ;;  %s2490_s11 = sphi %s2600_s11, %s3233_s11   ;;  %s2486_s10 = sphi %s2598_s10, %s3232_s10   ;;  %s2482_s30 = sphi %s2596_s30, %s3231_s30  }
  0x13   : > { %3199 = sst [smem:[#allocation34_spill]] %s2498_s13  ;;  %p1744_p0 = scmp.ge.s32.totalorder %s2510_s16, 1 }
  0x14   : > { %p2640_p1 = scmp.eq.s32.totalorder %s3180_s17, 0  ;;  %p270_p2 = scmp.lt.s32.totalorder %s2510_s16, 5 }
  0x15   : > { %s2524_s20 = smov [#allocation14]   ;;  %s2525_s23 = smov [#allocation17]  }
  0x16   : > { %s3200_s18 = scalar_select %p2640_p1, 1, 0 }
  0x17   : > { %p2645_p3 = pnand %p1744_p0, %p270_p2  ;;  %s282_s21 = sshll.u32 %s2524_s20, 4  ;;  %s2649_s21 = int_to_ptr.vmem [resolvable:$true] %s282_s21 }
  0x18   : > { %s307_s24 = sshll.u32 %s2525_s23, 4  ;;  %s2526_s25 = smov [#allocation20]   ;;  %s2659_s24 = int_to_ptr.vmem [resolvable:$true] %s307_s24 }
  0x19   : > { %s3201_s19 = scalar_select %p2645_p3, 1, 0 }
  0x1a   : > { %p1875_p4 = pneg %p2645_p3  ;;  %s2661_s26 = sshll.u32 %s2526_s25, 4  ;;  %s332_s26 = int_to_ptr.vmem [resolvable:$true] %s2661_s26 }
  0x1b   : > { %3202 = sst [smem:[#allocation35_spill]] %s3201_s19  ;;  %s3204_s1 = sld [smem:[#allocation37_spill]] }
  0x1c   : > { %p2655_p5 = pnand %p1875_p4, %p2640_p1 }
  0x1e   : > { %p2671_p7 = pneg %p2655_p5 }
  0x21   : > { %s2130_s29 = scalar_lea.hbm %s3204_s1, 512 }
  0x22   : > { %p2131_p6 = scmp.ne.s32.totalorder %s3204_s1, %s2130_s29  ;;  %p2137_p10 = scmp.lt.u32.totalorder %s2130_s29, %s3204_s1 }
  0x24   : > { %p2133_p8 = pnand %p2671_p7, %p2131_p6 }
  0x26   : > { %p2134_p9 = pneg %p2133_p8 }
  0x28   : > { %p2139_p11 = pnand %p2137_p10, %p2134_p9 }
  0x2a   : > { %2142 = shalt.err (!%p2139_p11)
}
  0x2b   : > { %s2143_s17 = scalar_lea.vmem %s2649_s21, 512  ;;  %p2151_p2 = scmp.lt.s32.totalorder %s2649_s21, %s2649_s21 }
  0x2c   : > { %p2144_p12 = scmp.ne.s32.totalorder %s2649_s21, %s2143_s17  ;;  %p2152_p4 = scmp.lt.s32.totalorder %s2143_s17, %s2143_s17 }
  0x2e   : > { %p2146_p13 = pnand %p2144_p12, %p2671_p7  ;;  %p2153_p6 = por %p2152_p4, %p2151_p2 }
  0x30   : > { %p2147_p0 = pneg %p2146_p13 }
  0x32   : > { %p2154_p8 = pnand %p2153_p6, %p2147_p0 }
  0x34   : > { %2157 = shalt.err (!%p2154_p8)
}
  0x35   : > { %s3187_s27 = smov 128   ;;  %s2528_s28 = smov 8  }
  0x36   : > { %1878 = dma.hbm_to_vmem [thread:$0]  (!%p2655_p5), %s3204_s1, 512, %s2649_s21, [#allocation15], %s3187_s27, %s3187_s27, %s2528_s28  }
  0x37   : > { %s3206_s3 = sld [smem:[#allocation39_spill]] }
  0x3d   : > { %s2158_s17 = scalar_lea.hbm %s3206_s3, 16 }
  0x3e   : > { %p2159_p9 = scmp.ne.s32.totalorder %s3206_s3, %s2158_s17  ;;  %p2165_p12 = scmp.lt.u32.totalorder %s2158_s17, %s3206_s3 }
  0x40   : > { %p2161_p10 = pnand %p2159_p9, %p2671_p7 }
  0x42   : > { %p2162_p11 = pneg %p2161_p10 }
  0x44   : > { %p2167_p13 = pnand %p2165_p12, %p2162_p11 }
  0x46   : > { %2170 = shalt.err (!%p2167_p13)
}
  0x47   : > { %s2171_s21 = scalar_lea.vmem %s2659_s24, 16  ;;  %s2178_s12 = scalar_lea.vmem %s2659_s24, 32 }
  0x48   : > { %p2172_p0 = scmp.ne.s32.totalorder %s2659_s24, %s2171_s21  ;;  %p2179_p6 = scmp.lt.s32.totalorder %s2659_s24, %s2659_s24 }
  0x49   : > { %p2180_p8 = scmp.lt.s32.totalorder %s2178_s12, %s2171_s21 }
  0x4a   : > { %p2174_p2 = pnand %p2172_p0, %p2671_p7 }
  0x4b   : > { %p2181_p9 = por %p2180_p8, %p2179_p6 }
  0x4c   : > { %p2175_p4 = pneg %p2174_p2 }
  0x4e   : > { %p2182_p10 = pnand %p2181_p9, %p2175_p4 }
  0x50   : > { %2185 = shalt.err (!%p2182_p10)
}
  0x51   : > { %1884 = dma.hbm_to_vmem [thread:$0]  (!%p2655_p5), %s3206_s3, 16, %s2659_s24, [#allocation18]  }
  0x52   : > { %s2186_s20 = scalar_lea.hbm %s3175_s5, 16 }
  0x53   : > { %p2187_p11 = scmp.ne.s32.totalorder %s3175_s5, %s2186_s20  ;;  %p2193_p0 = scmp.lt.u32.totalorder %s2186_s20, %s3175_s5 }
  0x55   : > { %p2189_p12 = pnand %p2187_p11, %p2671_p7 }
  0x57   : > { %p2190_p13 = pneg %p2189_p12 }
  0x59   : > { %p2195_p2 = pnand %p2193_p0, %p2190_p13 }
  0x5b   : > { %2198 = shalt.err (!%p2195_p2)
}
  0x5c   : > { %s2199_s12 = scalar_lea.vmem %s332_s26, 16  ;;  %s2206_s24 = scalar_lea.vmem %s332_s26, 32 }
  0x5d   : > { %p2200_p4 = scmp.ne.s32.totalorder %s332_s26, %s2199_s12  ;;  %p2207_p9 = scmp.lt.s32.totalorder %s332_s26, %s332_s26 }
  0x5e   : > { %p2208_p10 = scmp.lt.s32.totalorder %s2206_s24, %s2199_s12 }
  0x5f   : > { %p2202_p6 = pnand %p2200_p4, %p2671_p7 }
  0x60   : > { %p2209_p3 = por %p2208_p10, %p2207_p9 }
  0x61   : > { %p2203_p8 = pneg %p2202_p6 }
  0x63   : > { %p2210_p1 = pnand %p2209_p3, %p2203_p8 }
  0x65   : > { %2213 = shalt.err (!%p2210_p1)
}
  0x66   : > { %1890 = dma.hbm_to_vmem [thread:$0]  (!%p2655_p5), %s3175_s5, 16, %s332_s26, [#allocation21]  }
  0x67   : > { %s2529_s19 = smov [#allocation23]   ;;  %s2530_s20 = smov [#allocation16]  }
  0x68   : > { %s355_s29 = sshll.u32 %s2529_s19, 4  ;;  %s296_s23 = sshll.u32 %s2530_s20, 4  ;;  %s356_s29 = int_to_ptr.vmem [resolvable:$true] %s355_s29  ;;  %s297_s23 = int_to_ptr.vmem [resolvable:$true] %s296_s23 }
  0x69   : > { %s2214_s21 = scalar_lea.hbm %s3177_s7, 16 }
  0x6a   : > { %p2215_p1 = scmp.ne.s32.totalorder %s3177_s7, %s2214_s21  ;;  %p2221_p12 = scmp.lt.u32.totalorder %s2214_s21, %s3177_s7 }
  0x6c   : > { %p2217_p3 = pnand %p2215_p1, %p2671_p7 }
  0x6e   : > { %p2218_p11 = pneg %p2217_p3 }
  0x70   : > { %p2223_p13 = pnand %p2221_p12, %p2218_p11 }
  0x72   : > { %2226 = shalt.err (!%p2223_p13)
}
  0x73   : > { %s2227_s26 = scalar_lea.vmem %s356_s29, 16  ;;  %s2234_s13 = scalar_lea.vmem %s356_s29, 32 }
  0x74   : > { %p2228_p0 = scmp.ne.s32.totalorder %s356_s29, %s2227_s26  ;;  %p2235_p6 = scmp.lt.s32.totalorder %s356_s29, %s356_s29 }
  0x75   : > { %p2236_p8 = scmp.lt.s32.totalorder %s2234_s13, %s2227_s26 }
  0x76   : > { %p2230_p2 = pnand %p2228_p0, %p2671_p7 }
  0x77   : > { %p2237_p9 = por %p2236_p8, %p2235_p6 }
  0x78   : > { %p2231_p4 = pneg %p2230_p2 }
  0x7a   : > { %p2238_p10 = pnand %p2237_p9, %p2231_p4 }
  0x7c   : > { %2241 = shalt.err (!%p2238_p10)
}
  0x7d   : > { %1896 = dma.hbm_to_vmem [thread:$0]  (!%p2655_p5), %s3177_s7, 16, %s356_s29, [#allocation24]  }
  0x7e   : > { %s3207_s2 = sld [smem:[#allocation38_spill]] }
  0x84   : > { %s2242_s17 = scalar_lea.hbm %s3207_s2, 64 }
  0x85   : > { %p2243_p1 = scmp.ne.s32.totalorder %s3207_s2, %s2242_s17  ;;  %p2249_p12 = scmp.lt.u32.totalorder %s2242_s17, %s3207_s2 }
  0x87   : > { %p2245_p3 = pnand %p2243_p1, %p2671_p7 }
  0x89   : > { %p2246_p11 = pneg %p2245_p3 }
  0x8b   : > { %p2251_p13 = pnand %p2249_p12, %p2246_p11 }
  0x8d   : > { %2254 = shalt.err (!%p2251_p13)
}
  0x8e   : > { %s2255_s26 = scalar_lea.vmem %s297_s23, 64  ;;  %p2263_p6 = scmp.lt.s32.totalorder %s297_s23, %s297_s23 }
  0x8f   : > { %p2256_p0 = scmp.ne.s32.totalorder %s297_s23, %s2255_s26  ;;  %p2264_p8 = scmp.lt.s32.totalorder %s2255_s26, %s2255_s26 }
  0x91   : > { %p2258_p2 = pnand %p2256_p0, %p2671_p7  ;;  %p2265_p9 = por %p2264_p8, %p2263_p6 }
  0x93   : > { %p2259_p4 = pneg %p2258_p2 }
  0x95   : > { %p2266_p10 = pnand %p2265_p9, %p2259_p4 }
  0x97   : > { %2269 = shalt.err (!%p2266_p10)
}
  0x98   : > { %1881 = dma.hbm_to_vmem [thread:$0]  (!%p2655_p5), %s3207_s2, 64, %s297_s23, [#allocation15]  }
  0x99   : > { %s2531_s19 = smov [#allocation19]   ;;  %s2532_s27 = smov [#allocation22]  }
  0x9a   : > { %s317_s20 = sshll.u32 %s2531_s19, 4  ;;  %s341_s25 = sshll.u32 %s2532_s27, 4  ;;  %s318_s20 = int_to_ptr.vmem [resolvable:$true] %s317_s20  ;;  %s342_s25 = int_to_ptr.vmem [resolvable:$true] %s341_s25 }
  0x9b   : > { %s3208_s4 = sld [smem:[#allocation40_spill]] }
  0xa1   : > { %s2270_s12 = scalar_lea.hbm %s3208_s4, 2048 }
  0xa2   : > { %p2271_p1 = scmp.ne.s32.totalorder %s3208_s4, %s2270_s12  ;;  %p2277_p12 = scmp.lt.u32.totalorder %s2270_s12, %s3208_s4 }
  0xa4   : > { %p2273_p3 = pnand %p2271_p1, %p2671_p7 }
  0xa6   : > { %p2274_p11 = pneg %p2273_p3 }
  0xa8   : > { %p2279_p13 = pnand %p2277_p12, %p2274_p11 }
  0xaa   : > { %2282 = shalt.err (!%p2279_p13)
}
  0xab   : > { %s2283_s23 = scalar_lea.vmem %s318_s20, 2048  ;;  %p2291_p6 = scmp.lt.s32.totalorder %s318_s20, %s318_s20 }
  0xac   : > { %p2284_p0 = scmp.ne.s32.totalorder %s318_s20, %s2283_s23  ;;  %p2292_p8 = scmp.lt.s32.totalorder %s2283_s23, %s2283_s23 }
  0xae   : > { %p2286_p2 = pnand %p2284_p0, %p2671_p7  ;;  %p2293_p9 = por %p2292_p8, %p2291_p6 }
  0xb0   : > { %p2287_p4 = pneg %p2286_p2 }
  0xb2   : > { %p2294_p10 = pnand %p2293_p9, %p2287_p4 }
  0xb4   : > { %2297 = shalt.err (!%p2294_p10)
}
  0xb5   : > { %s3209_s13 = smov 128   ;;  %s2298_s12 = scalar_lea.hbm %s3176_s6, 256 }
  0xb6   : > { %1887 = dma.hbm_to_vmem [thread:$0]  (!%p2655_p5), %s3208_s4, 2048, %s318_s20, [#allocation18], %s3209_s13, %s3209_s13, %s2528_s28  }
  0xb7   : > { %p2299_p1 = scmp.ne.s32.totalorder %s3176_s6, %s2298_s12  ;;  %p2305_p12 = scmp.lt.u32.totalorder %s2298_s12, %s3176_s6 }
  0xb9   : > { %p2301_p3 = pnand %p2299_p1, %p2671_p7 }
  0xbb   : > { %p2302_p11 = pneg %p2301_p3 }
  0xbd   : > { %p2307_p13 = pnand %p2305_p12, %p2302_p11 }
  0xbf   : > { %2310 = shalt.err (!%p2307_p13)
}
  0xc0   : > { %s2311_s23 = scalar_lea.vmem %s342_s25, 256  ;;  %p2319_p6 = scmp.lt.s32.totalorder %s342_s25, %s342_s25 }
  0xc1   : > { %p2312_p0 = scmp.ne.s32.totalorder %s342_s25, %s2311_s23  ;;  %p2320_p8 = scmp.lt.s32.totalorder %s2311_s23, %s2311_s23 }
  0xc3   : > { %p2314_p2 = pnand %p2312_p0, %p2671_p7  ;;  %p2321_p9 = por %p2320_p8, %p2319_p6 }
  0xc5   : > { %p2315_p4 = pneg %p2314_p2 }
  0xc7   : > { %p2322_p10 = pnand %p2321_p9, %p2315_p4 }
  0xc9   : > { %2325 = shalt.err (!%p2322_p10)
}
  0xca   : > { %1893 = dma.hbm_to_vmem [thread:$0]  (!%p2655_p5), %s3176_s6, 256, %s342_s25, [#allocation21], %s3209_s13, %s3209_s13, %s2528_s28  }
  0xcb   : > { %s2533_s27 = smov [#allocation25]   ;;  %s2326_s24 = scalar_lea.hbm %s3178_s8, 1024 }
  0xcc   : > { %s365_s17 = sshll.u32 %s2533_s27, 4  ;;  %p2327_p1 = scmp.ne.s32.totalorder %s3178_s8, %s2326_s24  ;;  %s366_s17 = int_to_ptr.vmem [resolvable:$true] %s365_s17 }
  0xcd   : > { %p2333_p12 = scmp.lt.u32.totalorder %s2326_s24, %s3178_s8 }
  0xce   : > { %p2329_p3 = pnand %p2327_p1, %p2671_p7 }
  0xd0   : > { %p2330_p11 = pneg %p2329_p3 }
  0xd2   : > { %p2335_p13 = pnand %p2333_p12, %p2330_p11 }
  0xd4   : > { %2338 = shalt.err (!%p2335_p13)
}
  0xd5   : > { %s2339_s28 = scalar_lea.vmem %s366_s17, 1024  ;;  %p2347_p6 = scmp.lt.s32.totalorder %s366_s17, %s366_s17 }
  0xd6   : > { %p2340_p0 = scmp.ne.s32.totalorder %s366_s17, %s2339_s28  ;;  %p2348_p8 = scmp.lt.s32.totalorder %s2339_s28, %s2339_s28 }
  0xd8   : > { %p2342_p2 = pnand %p2340_p0, %p2671_p7  ;;  %p2349_p9 = por %p2348_p8, %p2347_p6 }
  0xda   : > { %p2343_p4 = pneg %p2342_p2 }
  0xdc   : > { %p2350_p10 = pnand %p2349_p9, %p2343_p4 }
  0xde   : > { %2353 = shalt.err (!%p2350_p10)
}
  0xdf   : > { %s3189_s25 = smov 64   ;;  %s3190_s9 = smov 4  }
  0xe0   : > { %1899 = dma.hbm_to_vmem [thread:$0]  (!%p2655_p5), %s3178_s8, 1024, %s366_s17, [#allocation24], %s3189_s25, %s3189_s25, %s3190_s9  }
  0xe1   : > { %s1743_s19 = sadd.s32 4294967294, %s2510_s16   ;;  %s38_s27 = sadd.s32 1, %s2502_s14 }
  0xe2   : > { %p39_p7 = scmp.ge.s32.totalorder %s38_s27, 2  ;;  %s41_s21 = sadd.s32 1, %s2506_s15 }
  0xe3   : > { %s50_s12 = sadd.s32 1, %s2490_s11  ;;  %p57_p1 = scmp.ne.s32.totalorder %s2490_s11, %s2486_s10 }
  0xe4   : > { %s3239_s27 = smov (%p39_p7, %s38_s27), 0  ;;  %s3241_s21 = smov (!%p39_p7, %s41_s21), %s2506_s15 }
  0xe5   : > { %s46_s22 = ssub.s32 %s2502_s14, %s3239_s27  ;;  %p58_p3 = scmp.eq.s32.totalorder %s2510_s16, 0 }
  0xe6   : > { %p43_p11 = scmp.ge.s32.totalorder %s3241_s21, 2  ;;  %p63_p5 = scmp.ne.s32.totalorder %s2486_s10, %s2482_s30 }
  0xe7   : > { %p2851_p12 = por %p58_p3, %p57_p1  ;;  %s3211_s24 = sadd.s32 4294967295, %s2510_s16  }
  0xe8   : > { %p257_p13 = scmp.eq.s32.totalorder %s3211_s24, 3  ;;  %s3243_s21 = smov (%p43_p11, %s3241_s21), 0 }
  0xe9   : > { %p3212_p0 = scmp.ne.s32.totalorder %s3200_s18, 0  ;;  %s45_s29 = ssub.s32 %s2506_s15, %s3243_s21 }
  0xea   : > { %p2865_p4 = por %p257_p13, %p57_p1  ;;  %p263_p6 = scmp.eq.s32.totalorder %s1743_s19, 3 }
  0xeb   : > { %p2861_p2 = por %p3212_p0, %p63_p5  ;;  %s47_s23 = sor.u32 %s46_s22, %s45_s29 }
  0xec   : > { %s3214_s26 = scalar_select %p2865_p4, 1, 0 }
  0xed   : > { %p1916_p8 = scmp.lt.s32.totalorder %s2510_s16, 4  ;;  %p48_p9 = scmp.eq.s32.totalorder %s47_s23, 0 }
  0xee   : > { %p2872_p10 = por %p263_p6, %p63_p5  ;;  %s379_s13 = sand.u32 1, %s2490_s11  }
  0xef   : > { %s1755_s20 = sshll.u32 %s2502_s14, 1  ;;  %s1754_s25 = sshll.u32 %s379_s13, 3 }
  0xf0   : > { %s3215_s28 = scalar_select %p2872_p10, 1, 0 }
  0xf1   : > { %s2879_s24 = scalar_select %p48_p9, %s2490_s11, %s50_s12  }
  0xf2   : > { %s1756_s9 = sshll.u32 %s2506_s15, 2  ;;  %s383_s2 = scalar_lea.vmem [#allocation11], %s1754_s25 }
  0xf3   : > { %s389_s1 = sadd.s32 %s1756_s9, %s1755_s20  ;;  %s392_s3 = sshll.u32 %s383_s2, 4  ;;  %s2882_s3 = int_to_ptr.vmem [resolvable:$true] %s392_s3 }
  0xf4   : > { %s1757_s4 = sshll.u32 %s389_s1, 6  ;;  %s3216_s29 = sld [smem:[#allocation36_spill]] }
  0xf5   : > { %p2893_p7 = pnand %p1916_p8, %p2851_p12  ;;  %s2897_s1 = scalar_lea.sflag [#allocation12], %s379_s13 }
  0xf7   : > { %p2356_p3 = pneg %p2893_p7 }
  0xfa   : > { %s2887_s23 = scalar_lea.hbm %s3216_s29, %s1757_s4  ;;  %s2359_s9 = scalar_lea.hbm %s3216_s29, 512 }
  0xfb   : > { %s2354_s2 = scalar_lea.hbm %s2887_s23, 128  ;;  %p2360_p12 = scmp.lt.u32.totalorder %s2887_s23, %s3216_s29 }
  0xfc   : > { %p2355_p1 = scmp.ne.s32.totalorder %s2887_s23, %s2354_s2  ;;  %p2361_p13 = scmp.lt.u32.totalorder %s2359_s9, %s2354_s2 }
  0xfd   : > { %p2363_p6 = scmp.lt.u32.totalorder %s2354_s2, %s2887_s23 }
  0xfe   : > { %p2357_p11 = pnand %p2356_p3, %p2355_p1  ;;  %p2362_p0 = por %p2361_p13, %p2360_p12 }
 0x100   : > { %p2358_p5 = pneg %p2357_p11  ;;  %p2364_p8 = por %p2363_p6, %p2362_p0 }
 0x102   : > { %p2365_p9 = pnand %p2364_p8, %p2358_p5 }
 0x104   : > { %2368 = shalt.err (!%p2365_p9)
}
 0x105   : > { %s2369_s13 = scalar_lea.vmem %s2882_s3, 128  ;;  %s2536_s19 = smov [#allocation11]  }
 0x106   : > { %p2370_p1 = scmp.ne.s32.totalorder %s2882_s3, %s2369_s13  ;;  %s2374_s22 = sshll.u32 %s2536_s19, 4  ;;  %s2375_s22 = int_to_ptr.vmem [resolvable:$false] %s2374_s22 }
 0x107   : > { %s2376_s4 = scalar_lea.vmem %s2375_s22, 256  ;;  %p2377_p4 = scmp.lt.s32.totalorder %s2882_s3, %s2375_s22 }
 0x108   : > { %p2372_p11 = pnand %p2370_p1, %p2356_p3  ;;  %p2378_p12 = scmp.lt.s32.totalorder %s2376_s4, %s2369_s13 }
 0x10a   : > { %p2373_p10 = pneg %p2372_p11  ;;  %p2379_p13 = por %p2378_p12, %p2377_p4 }
 0x10c   : > { %p2380_p0 = pnand %p2379_p13, %p2373_p10 }
 0x10e   : > { %2383 = shalt.err (!%p2380_p0)
}
 0x10f   : > { %s3218_s2 = smov 4   ;;  %s3219_s25 = smov 64  }
 0x110   : > { %1903 = dma.hbm_to_vmem [thread:$0]  (!%p2893_p7), %s2887_s23, 128, %s2882_s3, %s2897_s1, %s3219_s25, %s3219_s25, %s3218_s2  }
 0x111   : > { %s3220_s9 = sld [smem:[#allocation35_spill]] }
 0x117   : > { %p3221_p3 = scmp.ne.s32.totalorder %s3220_s9, 0 }
 0x118   : > { %s2931_s17 = sand.u32 (!%p3221_p3), 1, %s2486_s10  }
 0x119   : > { %404 = sbr.rel (%p3221_p3) target bundleno = 1361 (0x551), region = 56  ;;  %s1759_s20 = sshll.u32 (!%p3221_p3), %s2931_s17, 3 }
 0x11a   : > { %s407_s13 = scalar_lea.sflag (!%p3221_p3), [#allocation12], %s2931_s17  ;;  %s410_s19 = scalar_lea.vmem (!%p3221_p3), [#allocation11], %s1759_s20 }
 0x120   : > { %2457 = dma.done.wait (%p2861_p2), %s407_s13, 128  }
 0x121   : > { %2459 = vsyncadd (%p2861_p2), %s407_s13, 4294967168  ;;  %p3222_p4 = scmp.ne.s32.totalorder %s3200_s18, 0 }
 0x123   : > { %2461 = dma.done.wait (%p3222_p4), [#allocation15], 576  }
 0x124   : > { %2463 = vsyncadd (%p3222_p4), [#allocation15], 4294966720 }
 0x125   : > { %2465 = dma.done.wait (%p3222_p4), [#allocation18], 2064  }
 0x126   : > { %2467 = vsyncadd (%p3222_p4), [#allocation18], 4294965232 }
 0x127   : > { %2469 = dma.done.wait (%p3222_p4), [#allocation21], 272  }
 0x128   : > { %2471 = vsyncadd (%p3222_p4), [#allocation21], 4294967024 }
 0x129   : > { %2473 = dma.done.wait (%p3222_p4), [#allocation24], 1040  }
 0x12a   : > { %2475 = vsyncadd (%p3222_p4), [#allocation24], 4294966256  ;;  %s1768_s3 = sshll.u32 %s2931_s17, 4  ;;  %s3223_s23 = sld [smem:[#allocation33_spill]] }
 0x12b   : > { %s2956_s0 = scalar_lea.vmem [#allocation26], %s1768_s3 }
 0x130   : > { %p1769_p2 = scmp.ne.s32.totalorder %s3223_s23, 0 }
 0x131   : > { %v2537_v0 = vmov (!%p1769_p2), 0.0  }
 0x132   : > { %483 = sbr.rel (%p1769_p2) target bundleno = 313 (0x139), region = 96  ;;  %484 = vst [vmem:[#allocation9] sm:$0xff] (!%p1769_p2), %v2537_v0  ;;  %485 = vst [vmem:[#allocation9 + $0x8] sm:$0xff] (!%p1769_p2), %v2537_v0 }
 0x133   : > { %486 = vst [vmem:[#allocation10] sm:$0x7] (!%p1769_p2), %v2537_v0 }
 0x139 PF: > { %v2034_v1 = vld [vmem:[#allocation14 + $0x4] ss:$8 sps:$4 sm:$0xff]   ;;  %v2036_v2 = vld [vmem:[#allocation14] ss:$8 sps:$4 sm:$0xff]   ;;  %v2538_v3 = vmov 0   ;;  %v2040_v6 = vld [vmem:[%s410_s19] sm:$0xff]   ;;  %v586_v24 = vlaneseq }
 0x13a   : > { %554 = vmatprep.mubr.bf16.mxu0 %v2538_v3  ;;  %774 = vmatprep.mubr.bf16.mxu1 %v2538_v3  ;;  %v2037_v4 = vld [vmem:[#allocation14 + $0x14] ss:$8 sps:$4 sm:$0xff]   ;;  %v2039_v5 = vld [vmem:[#allocation14 + $0x10] ss:$8 sps:$4 sm:$0xff]   ;;  %vm518_vm0 = vcmask 261120   ;;  %vm826_vm1 = vcmask 130048  }
 0x13b   : > { %522 = vmatprep.subr.bf16.mxu0 %v2034_v1  ;;  %v579_v7 = vld [vmem:[#allocation10] sm:$0x7]  ;;  %v2044_v10 = vld [vmem:[#allocation19 + $0x14] ss:$8 sps:$4 sm:$0xff]   ;;  %v2046_v11 = vld [vmem:[#allocation19 + $0x10] ss:$8 sps:$4 sm:$0xff]  }
 0x13c   : > { %523 = vmatpush1.bf16.msra.mxu0 %v2036_v2  ;;  %580 = vst [vmem:[#allocation2 + $0x5] sm:$0x7] %v579_v7  ;;  %v2041_v8 = vld [vmem:[#allocation19 + $0x4] ss:$8 sps:$4 sm:$0xff]   ;;  %v2043_v9 = vld [vmem:[#allocation19] ss:$8 sps:$4 sm:$0xff]  }
 0x13d   : > { %524 = vmatprep.subr.bf16.mxu0 %v2037_v4  ;;  %742 = vmatprep.subr.bf16.mxu1 %v2041_v8  ;;  %v2047_v12 = vld [vmem:[#allocation19 + $0x24] ss:$8 sps:$4 sm:$0xff]   ;;  %v2049_v13 = vld [vmem:[#allocation19 + $0x20] ss:$8 sps:$4 sm:$0xff]   ;;  %v2050_v14 = vld [vmem:[#allocation19 + $0x34] ss:$8 sps:$4 sm:$0xff]  }
 0x13e   : > { %743 = vmatpush1.bf16.msra.mxu1 %v2043_v9  ;;  %v2052_v15 = vld [vmem:[#allocation19 + $0x30] ss:$8 sps:$4 sm:$0xff]   ;;  %v2053_v16 = vld [vmem:[#allocation19 + $0x44] ss:$8 sps:$4 sm:$0xff]   ;;  %v2055_v17 = vld [vmem:[#allocation19 + $0x40] ss:$8 sps:$4 sm:$0xff]  }
 0x13f   : > { %744 = vmatprep.subr.bf16.mxu1 %v2044_v10  ;;  %v2056_v18 = vld [vmem:[#allocation19 + $0x54] ss:$8 sps:$4 sm:$0xff]   ;;  %v2058_v19 = vld [vmem:[#allocation19 + $0x50] ss:$8 sps:$4 sm:$0xff]   ;;  %v2059_v20 = vld [vmem:[#allocation19 + $0x64] ss:$8 sps:$4 sm:$0xff]  }
 0x140   : > { %525 = vmatpush1.bf16.msra.mxu0 %v2039_v5  ;;  %v2061_v21 = vld [vmem:[#allocation19 + $0x60] ss:$8 sps:$4 sm:$0xff]   ;;  %v2062_v22 = vld [vmem:[#allocation19 + $0x74] ss:$8 sps:$4 sm:$0xff]   ;;  %v2064_v23 = vld [vmem:[#allocation19 + $0x70] ss:$8 sps:$4 sm:$0xff]  }
 0x141   : > { %v2959_v25 = vshrl.u32 %v586_v24, 7  ;;  %v585_v30 = vld [vmem:[#allocation16] sm:$0xf]  ;;  %v1776_v60 = vld [vmem:[#allocation17] ss:$0 sm:$0xff]  ;;  %s2539_s18 = smov 112  }
 0x142   : > { %745 = vmatpush1.bf16.msra.mxu1 %v2046_v11  ;;  %v839_v24 = vld [vmem:[#allocation9] sm:$0xff]   ;;  %s2985_s12 = smov 0  }
 0x143   : > { %1775 = vmatmul.mubr.msk.bf16.vlgmr.msra.gmra.mrb[0].mxu0 %vm518_vm0, %v2040_v6  ;;  %746 = vmatprep.subr.bf16.mxu1 %v2047_v12  ;;  %v2962_v27 = vsub.s32 3, %v2959_v25  ;;  %v2965_v28 = vsub.s32 2, %v2959_v25  ;;  %v2968_v33 = vsub.s32 1, %v2959_v25  ;;  %v2973_v39 = vsub.s32 0, %v2959_v25 }
 0x145   : > { %v589_v37 = vrot.slane %v585_v30, %v2962_v27  ;;  %v597_v38 = vrot.slane %v585_v30, %v2965_v28  ;;  %v607_v41 = vrot.slane %v585_v30, %v2968_v33  ;;  %v617_v47 = vrot.slane %v585_v30, %v2973_v39 }
 0x146   : > { %747 = vmatpush1.bf16.msra.mxu1 %v2049_v13 }
 0x147   : > { %748 = vmatprep.subr.bf16.mxu1 %v2050_v14 }
 0x14a   : > { %749 = vmatpush1.bf16.msra.mxu1 %v2052_v15 }
 0x14b   : > { %750 = vmatprep.subr.bf16.mxu1 %v2053_v16 }
 0x14e   : > { %751 = vmatpush1.bf16.msra.mxu1 %v2055_v17 }
 0x14f   : > { %752 = vmatprep.subr.bf16.mxu1 %v2056_v18 }
 0x152   : > { %753 = vmatpush1.bf16.msra.mxu1 %v2058_v19 }
 0x153   : > { %754 = vmatprep.subr.bf16.mxu1 %v2059_v20 }
 0x156   : > { %755 = vmatpush1.bf16.msra.mxu1 %v2061_v21 }
 0x157   : > { %756 = vmatprep.subr.bf16.mxu1 %v2062_v22 }
 0x15a   : > { %757 = vmatpush1.bf16.msra.mxu1 %v2064_v23 }
 0x216   : > { %v556_v26 = vpop.f32.mrb[0].mxu0 }
 0x217   : > { %581 = vst [vmem:[#allocation2 + $0x8] sm:$0xff] %v556_v26  ;;  %v558_v29 = vpop.f32.mrb[1].mxu0  ;;  %v590_v44 = vmul.f32 %v589_v37, %v556_v26  ;;  %v840_v26 = vld [vmem:[#allocation9 + $0x8] sm:$0xff]  }
 0x218   : > { %v565_v31 = vsub.f32 0.0, %v558_v29  ;;  %v560_v32 = vpop.f32.mrb[2].mxu0 }
 0x219   : > { %582 = vst [vmem:[#allocation2 + $0x10] sm:$0xff] %v560_v32  ;;  %v562_v34 = vpop.f32.mrb[3].mxu0  ;;  %v591_v53 = vmul.f32 %v589_v37, %v560_v32 }
 0x21a   : > { %v567_v35 = vmul.f32 1.442695, %v565_v31  ;;  %v566_v36 = vsub.f32 0.0, %v562_v34 }
 0x21c   : > { %2065 = vpow2.f32 %v567_v35  ;;  %v569_v40 = vmul.f32 1.442695, %v566_v36 }
 0x21e   : > { %v592_v42 = vld [vmem:[#allocation2 + $0x7] sm:$0xff]  ;;  %2067 = vpow2.f32 %v569_v40 }
 0x21f   : > { %v602_v43 = vld [vmem:[#allocation2 + $0x6] sm:$0xff]  ;;  %v598_v45 = vmul.f32 %v597_v38, %v592_v42 }
 0x220   : > { %v612_v46 = vld [vmem:[#allocation2 + $0x5] sm:$0xff]  ;;  %v583_v48 = vld [vmem:[#allocation2 + $0x15] sm:$0x7]  ;;  %v608_v52 = vmul.f32 %v607_v41, %v602_v43  ;;  %v613_v55 = vld [vmem:[#allocation2 + $0xd] sm:$0xff] }
 0x221   : > { %v593_v49 = vld [vmem:[#allocation2 + $0xf] sm:$0xff]  ;;  %v600_v51 = vadd.f32 %v598_v45, %v590_v44  ;;  %584 = vst [vmem:[#allocation10] sm:$0x7] %v583_v48  ;;  %v618_v57 = vmul.f32 %v617_v47, %v612_v46  ;;  %v619_v63 = vmul.f32 %v617_v47, %v613_v55 }
 0x222   : > { %v603_v50 = vld [vmem:[#allocation2 + $0xe] sm:$0xff]  ;;  %v599_v54 = vmul.f32 %v597_v38, %v593_v49 }
 0x223   : > { %v610_v56 = vadd.f32 %v608_v52, %v600_v51  ;;  %v609_v59 = vmul.f32 %v607_v41, %v603_v50 }
 0x224   : > { %v601_v58 = vadd.f32 %v599_v54, %v591_v53 }
 0x225   : > { %v620_v61 = vadd.f32 %v618_v57, %v610_v56 }
 0x226   : > { %v611_v62 = vadd.f32 %v609_v59, %v601_v58  ;;  %v2066_v0 = vpop.eup %2065 }
 0x227   : > { %v571_v1 = vadd.f32 1.0, %v2066_v0  ;;  %v629_v3 = vadd.f32 %v1776_v60, %v620_v61 }
 0x228   : > { %v621_v2 = vadd.f32 %v619_v63, %v611_v62  ;;  %v2068_v4 = vpop.eup %2067 }
 0x229   : > { %2069 = vrcp.f32 %v571_v1  ;;  %v572_v5 = vadd.f32 1.0, %v2068_v4  ;;  %v631_v7 = vsub.f32 0.0, %v629_v3 }
 0x22a   : > { %v630_v6 = vadd.f32 %v1776_v60, %v621_v2 }
 0x22b   : > { %2071 = vrcp.f32 %v572_v5  ;;  %v633_v9 = vmul.f32 1.442695, %v631_v7 }
 0x22c   : > { %v632_v8 = vsub.f32 0.0, %v630_v6 }
 0x22d   : > { %2073 = vpow2.f32 %v633_v9 }
 0x22e   : > { %v635_v10 = vmul.f32 1.442695, %v632_v8 }
 0x230   : > { %2075 = vpow2.f32 %v635_v10 }
 0x233   : > { %v2070_v11 = vpop.eup %2069 }
 0x234   : > { %v575_v12 = vmul.f32 %v2070_v11, %v558_v29  ;;  %v1793_v29 = vld [vmem:[#allocation20] ss:$0 sm:$0xff] }
 0x235   : > { %v2072_v13 = vpop.eup %2071 }
 0x236   : > { %577 = vst [vmem:[#allocation4] sm:$0xff] %v575_v12  ;;  %v576_v14 = vmul.f32 %v2072_v13, %v562_v34 }
 0x237   : > { %v2074_v15 = vpop.eup %2073 }
 0x238   : > { %578 = vst [vmem:[#allocation4 + $0x8] sm:$0xff] %v576_v14  ;;  %v637_v16 = vadd.f32 1.0, %v2074_v15 }
 0x23a   : > { %v2076_v17 = vpop.eup %2075  ;;  %2077 = vrcp.f32 %v637_v16 }
 0x23b   : > { %v638_v18 = vadd.f32 1.0, %v2076_v17 }
 0x23d   : > { %2079 = vrcp.f32 %v638_v18 }
 0x244   : > { %v2078_v19 = vpop.eup %2077 }
 0x245   : > { %v641_v20 = vmul.f32 %v2078_v19, %v629_v3 }
 0x247   : > { %v2080_v21 = vpop.eup %2079  ;;  %643 = vst [vmem:[#allocation3] sm:$0xff] %v641_v20 }
 0x248   : > { %v642_v22 = vmul.f32 %v2080_v21, %v630_v6 }
 0x24a   : > { %644 = vst [vmem:[#allocation3 + $0x8] sm:$0xff] %v642_v22  ;;  %v645_v23 = vpack.c.bf16 %v642_v22, %v641_v20 }
 0x24c   : > { %775 = vmatmul.mubr.bf16.vlgmr.msra.gmra.mrb[0].mxu1 %v645_v23 }
 0x31f   : > { %v776_v30 = vpop.f32.mrb[0].mxu1 }
 0x320   : > { %v792_v31 = vadd.f32 %v1793_v29, %v776_v30  ;;  %v778_v32 = vpop.f32.mrb[1].mxu1 }
 0x321   : > { %827 = vst.msk [vmem:[#allocation6] sm:$0xff] %vm826_vm1, %v778_v32  ;;  %831 = vrot.lane.b32.xlu0 %v778_v32, %s2539_s18  ;;  %v780_v34 = vpop.f32.mrb[2].mxu1 }
 0x322   : > { %v796_v35 = vand.u32 2147483647, %v792_v31  ;;  %v793_v36 = vadd.f32 %v1793_v29, %v780_v34  ;;  %v782_v37 = vpop.f32.mrb[3].mxu1  ;;  %v794_v58 = vmax.f32 %v792_v31, 0.0 }
 0x323   : > { %828 = vst.msk [vmem:[#allocation6 + $0x8] sm:$0xff] %vm826_vm1, %v782_v37 }
 0x324   : > { %v798_v38 = vsub.f32 0.0, %v796_v35  ;;  %v797_v40 = vand.u32 2147483647, %v793_v36  ;;  %v795_v63 = vmax.f32 %v793_v36, 0.0 }
 0x325   : > { %833 = vrot.lane.b32.xlu0 %v782_v37, %s2539_s18 }
 0x326   : > { %v800_v41 = vmul.f32 1.442695, %v798_v38  ;;  %v799_v42 = vsub.f32 0.0, %v797_v40 }
 0x328   : > { %2081 = vpow2.f32 %v800_v41  ;;  %v802_v43 = vmul.f32 1.442695, %v799_v42 }
 0x32a   : > { %2083 = vpow2.f32 %v802_v43 }
 0x332   : > { %v2082_v44 = vpop.eup %2081 }
 0x333   : > { %v804_v45 = vadd.f32 1.0, %v2082_v44  ;;  %v807_v48 = vmul.f32 -0.5, %v2082_v44  ;;  %v810_v51 = vand.u32 2147483647, %v2082_v44 }
 0x334   : > { %v2084_v46 = vpop.eup %2083 }
 0x335   : > { %2085 = vlog2.f32 %v804_v45  ;;  %v813_v47 = vadd.f32 1.0, %v2084_v46  ;;  %v816_v49 = vmul.f32 -0.5, %v2084_v46  ;;  %v808_v50 = vadd.f32 1.0, %v807_v48 }
 0x336   : > { %v819_v54 = vand.u32 2147483647, %v2084_v46  ;;  %vm811_vm2 = vcmp.lt.f32.partialorder %v810_v51, 0.0004427343 }
 0x337   : > { %2087 = vlog2.f32 %v813_v47  ;;  %v817_v52 = vadd.f32 1.0, %v816_v49  ;;  %v809_v56 = vmul.f32 %v2082_v44, %v808_v50 }
 0x338   : > { %vm820_vm3 = vcmp.lt.f32.partialorder %v819_v54, 0.0004427343 }
 0x339   : > { %v818_v61 = vmul.f32 %v2084_v46, %v817_v52 }
 0x33f   : > { %v2086_v53 = vpop.eup %2085 }
 0x340   : > { %v806_v55 = vmul.f32 0.6931472, %v2086_v53 }
 0x341   : > { %v2088_v57 = vpop.eup %2087 }
 0x342   : > { %v812_v59 = vsel %vm811_vm2, %v809_v56, %v806_v55  ;;  %v815_v60 = vmul.f32 0.6931472, %v2088_v57 }
 0x343   : > { %v822_v62 = vadd.f32 %v812_v59, %v794_v58 }
 0x344   : > { %v821_v0 = vsel %vm820_vm3, %v818_v61, %v815_v60 }
 0x345   : > { %824 = vst [vmem:[#allocation5] sm:$0xff] %v822_v62  ;;  %v823_v1 = vadd.f32 %v821_v0, %v795_v63 }
 0x347   : > { %825 = vst [vmem:[#allocation5 + $0x8] sm:$0xff] %v823_v1 }
 0x393   : > { %v832_v2 = vpop.permute.xlu0 %831 }
 0x394   : > { %837 = vst.msk [vmem:[#allocation7] sm:$0xff] %vm826_vm1, %v832_v2 }
 0x397   : > { %v834_v3 = vpop.permute.xlu0 %833 }
 0x398   : > { %838 = vst.msk [vmem:[#allocation7 + $0x8] sm:$0xff] %vm826_vm1, %v834_v3 }
 0x399 LB: >> { %s2997_s1 = sshll.u32 %s2522_s12, 3  ;;  %v1095_v9 = vsub.s32 4, %v2959_v25  ;;  %v1106_v11 = vsub.s32 5, %v2959_v25  ;;  %v1117_v13 = vsub.s32 6, %v2959_v25  ;;  %v1128_v19 = vsub.s32 7, %v2959_v25  ;;  %v3020_v42 = vld [vmem:[#allocation22] sm:$0xff]  ;;  %s2522_s12 = sphi %s2985_s12, %s846_s12   ;;  %v2518_v24 = vphi %v839_v24, %v3225_v24   ;;  %v2514_v26 = vphi %v840_v26, %v3224_v26  }
 0x39a   : >> { %s854_s22 = scalar_lea.vmem [#allocation6], %s2997_s1  ;;  %s856_s4 = scalar_lea.vmem [#allocation7], %s2997_s1  ;;  %v2540_v31 = vmov 1966171168   ;;  %v3022_v43 = vld [vmem:[#allocation22 + $0x8] sm:$0xff]  ;;  %vm1393_vm4 = vcmask 1041409  }
 0x39b   : >> { %v855_v4 = vld [vmem:[%s854_s22] sm:$0xff]  ;;  %v863_v32 = vunpack.c.l.s4 %v2540_v31  ;;  %s850_s2 = scalar_lea.vmem [#allocation5], %s2997_s1  ;;  %s852_s25 = scalar_lea.vmem [#allocation3], %s2997_s1  ;;  %vm1395_vm5 = vcmask 1042434   ;;  %vm1397_vm6 = vcmask 1043459   ;;  %vm1399_vm7 = vcmask 1044484  }
 0x39c   : >> { %v1063_v5 = vrot.slane %v855_v4, %v2968_v33  ;;  %v1052_v6 = vrot.slane %v855_v4, %v2973_v39  ;;  %v1074_v7 = vrot.slane %v855_v4, %v2965_v28  ;;  %v1085_v8 = vrot.slane %v855_v4, %v2962_v27  ;;  %v851_v36 = vld [vmem:[%s850_s2] sm:$0xff]  ;;  %s1408_s9 = scalar_lea.vmem [#allocation8], %s2997_s1  ;;  %s846_s12 = sadd.s32 1, %s2522_s12  }
 0x39d   : >> { %v1096_v10 = vrot.slane %v855_v4, %v1095_v9  ;;  %v1107_v12 = vrot.slane %v855_v4, %v1106_v11  ;;  %v1118_v14 = vrot.slane %v855_v4, %v1117_v13  ;;  %v1129_v20 = vrot.slane %v855_v4, %v1128_v19  ;;  %v853_v47 = vld [vmem:[%s852_s25] sm:$0xff]  ;;  %p843_p10 = scmp.ge.s32.totalorder %s846_s12, 2  }
 0x39e   : >> { %1065 = vbcast.lane.b32.xlu1 %v1063_v5, 256  ;;  %1054 = vbcast.lane.b32.xlu0 %v1052_v6, 256  ;;  %v864_v34 = vunpack.c.0.s8 %v863_v32  ;;  %v3029_v51 = vmul.f32 %v853_v47, %v851_v36  ;;  %v861_v61 = vcombine.high %v851_v36, %v851_v36  ;;  %vm1401_vm8 = vcmask 1045509   ;;  %s3226_s20 = sld [smem:[#allocation33_spill]] (%p843_p10)  ;;  %s3227_s13 = sld [smem:[#allocation34_spill]] (%p843_p10) }
 0x39f   : >> { %v857_v15 = vld [vmem:[%s856_s4] sm:$0xff]  ;;  %vm1403_vm9 = vcmask 1046534   ;;  %vm1405_vm10 = vcmask 1047559   ;;  %vm2542_vm11 = vmmov (%p843_p10), 0   ;;  %s1555_s12 = sshll.u32 (%p843_p10), %s2956_s0, 4  ;;  %s3228_s4 = sld [smem:[#allocation41_spill]] (%p843_p10)  ;;  %s3114_s12 = int_to_ptr.vmem [resolvable:$true] %s1555_s12 }
 0x3a0   : >> { %v1228_v16 = vrot.slane %v857_v15, %v2973_v39  ;;  %v1239_v17 = vrot.slane %v857_v15, %v2968_v33  ;;  %v1250_v18 = vrot.slane %v857_v15, %v2965_v28  ;;  %v1261_v21 = vrot.slane %v857_v15, %v2962_v27  ;;  %v2127_v33 = vld [vmem:[#allocation25 + $0x28] sm:$0xff] (%p843_p10)   ;;  %s1540_s25 = scalar_lea.sflag (%p843_p10), [#allocation13], %s2931_s17  ;;  %p3229_p5 = scmp.ne.s32.totalorder (%p843_p10), %s3214_s26, 0 }
 0x3a1   : >> { %v1272_v22 = vrot.slane %v857_v15, %v1095_v9  ;;  %v1283_v23 = vrot.slane %v857_v15, %v1106_v11  ;;  %v1294_v29 = vrot.slane %v857_v15, %v1117_v13  ;;  %v1305_v30 = vrot.slane %v857_v15, %v1128_v19 }
 0x3a2   : >> { %1069 = vbcast.lane.b32.xlu1 %v1063_v5, 264  ;;  %1058 = vbcast.lane.b32.xlu0 %v1052_v6, 264  ;;  %v3014_v35 = vsub.s32 %v864_v34, %v2959_v25  ;;  %v1795_v25 = vld [vmem:[#allocation23] ss:$0 sm:$0xff] (%p843_p10) }
 0x3a4   : >> { %v868_v37 = vrot.slane %v851_v36, %v3014_v35  ;;  %v1007_v55 = vrot.slane %v3029_v51, %v3014_v35  ;;  %s1805_s19 = sshll.u32 (%p843_p10), %s3226_s20, 1  ;;  %s1806_s3 = sshll.u32 (%p843_p10), %s3227_s13, 2 }
 0x3a5   : > { %s1552_s23 = sadd.s32 (%p843_p10), %s1806_s3, %s1805_s19  ;;  %s2543_s20 = smov (%p843_p10), [#allocation26]  }
 0x3a6   : >> { %1080 = vbcast.lane.b32.xlu1 %v1074_v7, 264  ;;  %1076 = vbcast.lane.b32.xlu0 %v1074_v7, 256  ;;  %v884_v38 = vrot.slane %v868_v37, %v3014_v35  ;;  %v876_v40 = vcombine.high %v868_v37, %v868_v37  ;;  %v1023_v59 = vrot.slane %v1007_v55, %v3014_v35  ;;  %s1807_s18 = sshll.u32 (%p843_p10), %s1552_s23, 7  ;;  %s2388_s13 = sshll.u32 (%p843_p10), %s2543_s20, 4  ;;  %s2389_s13 = int_to_ptr.vmem [resolvable:$false] %s2388_s13 }
 0x3a7   : >> { %v1015_v5 = vcombine.high %v1007_v55, %v1007_v55  ;;  %v875_v7 = vrot.slane %v861_v61, %v3014_v35  ;;  %s3112_s2 = scalar_lea.hbm (%p843_p10), %s3228_s4, %s1807_s18  ;;  %s2390_s19 = scalar_lea.vmem (%p843_p10), %s2389_s13, 512 }
 0x3a8   : >> { %v913_v41 = vrot.slane %v884_v38, %v2973_v39  ;;  %v898_v44 = vrot.slane %v876_v40, %v3014_v35  ;;  %v906_v54 = vcombine.high %v884_v38, %v884_v38  ;;  %v1140_v0 = vrot.slane %v1023_v59, %v2973_v39  ;;  %p2391_p9 = scmp.lt.s32.totalorder (%p843_p10), %s3114_s12, %s2389_s13 }
 0x3a9   : >> { %v877_v31 = vcombine.high %v875_v7, %v875_v7  ;;  %v1045_v38 = vcombine.high %v1023_v59, %v1023_v59  ;;  %v1000_v59 = vcombine.high %v3029_v51, %v3029_v51 }
 0x3aa   : >> { %1091 = vbcast.lane.b32.xlu1 %v1085_v8, 264  ;;  %1087 = vbcast.lane.b32.xlu0 %v1085_v8, 256  ;;  %v950_v45 = vmul.f32 %v913_v41, %v3020_v42  ;;  %v951_v46 = vmul.f32 %v913_v41, %v3022_v43  ;;  %v917_v49 = vrot.slane %v898_v44, %v2973_v39 }
 0x3ab   : >> { %v921_v58 = vrot.slane %v906_v54, %v2973_v39  ;;  %v908_v63 = vcombine.high %v898_v44, %v898_v44 }
 0x3ac   : >> { %v966_v48 = vmul.f32 1.442695, %v950_v45  ;;  %v968_v50 = vmul.f32 1.442695, %v951_v46  ;;  %v953_v52 = vmul.f32 %v917_v49, %v3022_v43  ;;  %v952_v53 = vmul.f32 %v917_v49, %v3020_v42 }
 0x3ad   : >> { %v955_v60 = vmul.f32 %v921_v58, %v3022_v43  ;;  %v954_v62 = vmul.f32 %v921_v58, %v3020_v42  ;;  %v925_v9 = vrot.slane %v908_v63, %v2973_v39 }
 0x3ae   : >> { %1102 = vbcast.lane.b32.xlu1 %v1096_v10, 264  ;;  %1098 = vbcast.lane.b32.xlu0 %v1096_v10, 256  ;;  %2090 = vpow2.f32 %v966_v48  ;;  %v972_v56 = vmul.f32 1.442695, %v953_v52  ;;  %v970_v57 = vmul.f32 1.442695, %v952_v53  ;;  %v1148_v52 = vrot.slane %v1045_v38, %v2973_v39 }
 0x3af   : >> { %2092 = vpow2.f32 %v968_v50  ;;  %v976_v2 = vmul.f32 1.442695, %v955_v60  ;;  %v974_v8 = vmul.f32 1.442695, %v954_v62  ;;  %v957_v13 = vmul.f32 %v925_v9, %v3022_v43 }
 0x3b0   : >> { %2094 = vpow2.f32 %v972_v56  ;;  %v956_v19 = vmul.f32 %v925_v9, %v3020_v42  ;;  %v905_v50 = vrot.slane %v877_v31, %v3014_v35  ;;  %v1014_v9 = vrot.slane %v1000_v59, %v3014_v35 }
 0x3b1   : >> { %2096 = vpow2.f32 %v970_v57 }
 0x3b2   : >> { %1113 = vbcast.lane.b32.xlu1 %v1107_v12, 264  ;;  %1109 = vbcast.lane.b32.xlu0 %v1107_v12, 256  ;;  %2098 = vpow2.f32 %v976_v2  ;;  %v978_v34 = vmul.f32 1.442695, %v956_v19  ;;  %v933_v61 = vrot.slane %v905_v50, %v2973_v39 }
 0x3b3   : >> { %2100 = vpow2.f32 %v974_v8 }
 0x3b4   : >> { %v961_v2 = vmul.f32 %v933_v61, %v3022_v43 }
 0x3b6   : >> { %1124 = vbcast.lane.b32.xlu1 %v1118_v14, 264  ;;  %1120 = vbcast.lane.b32.xlu0 %v1118_v14, 256  ;;  %v1037_v14 = vrot.slane %v1015_v5, %v3014_v35 }
 0x3b8   : >> { %v2091_v1 = vpop.eup %2090 }
 0x3b9   : >> { %v2093_v3 = vpop.eup %2092  ;;  %v1193_v11 = vmul.f32 %v2518_v24, %v2091_v1 }
 0x3ba   : >> { %1234 = vbcast.lane.b32.xlu1 %v1228_v16, 264  ;;  %1230 = vbcast.lane.b32.xlu0 %v1228_v16, 256  ;;  %v1194_v12 = vmul.f32 %v2514_v26, %v2093_v3  ;;  %v980_v26 = vmul.f32 1.442695, %v957_v13 }
 0x3bc   : >> { %2102 = vpow2.f32 %v980_v26 }
 0x3bd   : >> { %2104 = vpow2.f32 %v978_v34 }
 0x3be   : >> { %1245 = vbcast.lane.b32.xlu1 %v1239_v17, 264  ;;  %1241 = vbcast.lane.b32.xlu0 %v1239_v17, 256  ;;  %v891_v17 = vrot.slane %v875_v7, %v3014_v35  ;;  %v960_v7 = vmul.f32 %v933_v61, %v3020_v42 }
 0x3c0   : >> { %v929_v36 = vrot.slane %v891_v17, %v2973_v39  ;;  %v907_v51 = vcombine.high %v891_v17, %v891_v17 }
 0x3c2   : >> { %1256 = vbcast.lane.b32.xlu1 %v1250_v18, 264  ;;  %1252 = vbcast.lane.b32.xlu0 %v1250_v18, 256  ;;  %v959_v41 = vmul.f32 %v929_v36, %v3022_v43  ;;  %v958_v49 = vmul.f32 %v929_v36, %v3020_v42  ;;  %v909_v36 = vcombine.high %v905_v50, %v905_v50 }
 0x3c4   : >> { %v984_v55 = vmul.f32 1.442695, %v959_v41  ;;  %v982_v60 = vmul.f32 1.442695, %v958_v49 }
 0x3c6   : >> { %1135 = vbcast.lane.b32.xlu1 %v1129_v20, 264  ;;  %1131 = vbcast.lane.b32.xlu0 %v1129_v20, 256  ;;  %v2095_v20 = vpop.eup %2094  ;;  %2106 = vpow2.f32 %v984_v55 }
 0x3c7   : >> { %2108 = vpow2.f32 %v982_v60 }
 0x3ca   : >> { %1267 = vbcast.lane.b32.xlu1 %v1261_v21, 264  ;;  %1263 = vbcast.lane.b32.xlu0 %v1261_v21, 256 }
 0x3ce   : >> { %1278 = vbcast.lane.b32.xlu1 %v1272_v22, 264  ;;  %1274 = vbcast.lane.b32.xlu0 %v1272_v22, 256  ;;  %v2097_v22 = vpop.eup %2096 }
 0x3cf   : >> { %v2099_v48 = vpop.eup %2098 }
 0x3d0   : >> { %v2101_v54 = vpop.eup %2100 }
 0x3d2   : >> { %1289 = vbcast.lane.b32.xlu1 %v1283_v23, 264  ;;  %1285 = vbcast.lane.b32.xlu0 %v1283_v23, 256  ;;  %v1144_v23 = vrot.slane %v1037_v14, %v2973_v39 }
 0x3d6   : >> { %1300 = vbcast.lane.b32.xlu1 %v1294_v29, 264  ;;  %1296 = vbcast.lane.b32.xlu0 %v1294_v29, 256 }
 0x3da   : >> { %1311 = vbcast.lane.b32.xlu1 %v1305_v30, 264  ;;  %1307 = vbcast.lane.b32.xlu0 %v1305_v30, 256 }
 0x410   : >> { %v1066_v4 = vpop.permute.xlu1 %1065  ;;  %v1055_v6 = vpop.permute.xlu0 %1054 }
 0x411   : >> { %v1177_v10 = vmul.f32 %v1140_v0, %v1055_v6  ;;  %v1179_v44 = vmul.f32 %v1144_v23, %v1066_v4  ;;  %v2103_v6 = vpop.eup %2102 }
 0x413   : >> { %v3048_v21 = vadd.f32 %v1193_v11, %v1177_v10  ;;  %v2105_v11 = vpop.eup %2104 }
 0x414   : >> { %v1070_v15 = vpop.permute.xlu1 %1069  ;;  %v1059_v16 = vpop.permute.xlu0 %1058 }
 0x415   : >> { %v1178_v18 = vmul.f32 %v1140_v0, %v1059_v16  ;;  %v1180_v37 = vmul.f32 %v1144_v23, %v1070_v15  ;;  %v1197_v40 = vmul.f32 %v2097_v22, %v3048_v21  ;;  %v1047_v0 = vcombine.high %v1037_v14, %v1037_v14  ;;  %v2107_v31 = vpop.eup %2106 }
 0x416   : >> { %v986_v16 = vmul.f32 1.442695, %v960_v7  ;;  %v1030_v22 = vrot.slane %v1014_v9, %v3014_v35 }
 0x417   : >> { %v3050_v24 = vadd.f32 %v1194_v12, %v1178_v18  ;;  %v3062_v53 = vadd.f32 %v1197_v40, %v1179_v44  ;;  %v1152_v8 = vrot.slane %v1047_v0, %v2973_v39  ;;  %v988_v12 = vmul.f32 1.442695, %v961_v2  ;;  %v2109_v40 = vpop.eup %2108 }
 0x418   : >> { %v1081_v29 = vpop.permute.xlu1 %1080  ;;  %v1077_v30 = vpop.permute.xlu0 %1076  ;;  %v937_v18 = vrot.slane %v907_v51, %v2973_v39 }
 0x419   : >> { %v1198_v32 = vmul.f32 %v2095_v20, %v3050_v24  ;;  %v1182_v62 = vmul.f32 %v1148_v52, %v1081_v29  ;;  %v1181_v63 = vmul.f32 %v1148_v52, %v1077_v30  ;;  %v1201_v1 = vmul.f32 %v2101_v54, %v3062_v53 }
 0x41a   : >> { %2110 = vpow2.f32 %v988_v12  ;;  %v963_v26 = vmul.f32 %v937_v18, %v3022_v43  ;;  %v962_v34 = vmul.f32 %v937_v18, %v3020_v42  ;;  %v941_v52 = vrot.slane %v909_v36, %v2973_v39 }
 0x41b   : >> { %v3057_v47 = vadd.f32 %v1198_v32, %v1180_v37  ;;  %v1203_v10 = vadd.f32 %v1201_v1, %v1181_v63  ;;  %v1016_v32 = vcombine.high %v1014_v9, %v1014_v9  ;;  %2112 = vpow2.f32 %v986_v16 }
 0x41c   : >> { %v1092_v45 = vpop.permute.xlu1 %1091  ;;  %v1088_v46 = vpop.permute.xlu0 %1087  ;;  %v1156_v37 = vrot.slane %v1030_v22, %v2973_v39  ;;  %v992_v41 = vmul.f32 1.442695, %v963_v26  ;;  %v990_v49 = vmul.f32 1.442695, %v962_v34  ;;  %v965_v59 = vmul.f32 %v941_v52, %v3022_v43 }
 0x41d   : >> { %v1202_v58 = vmul.f32 %v2099_v48, %v3057_v47  ;;  %v1184_v19 = vmul.f32 %v1152_v8, %v1092_v45  ;;  %v1183_v20 = vmul.f32 %v1152_v8, %v1088_v46  ;;  %v1205_v17 = vmul.f32 %v2105_v11, %v1203_v10 }
 0x41e   : >> { %v1044_v48 = vrot.slane %v1016_v32, %v3014_v35  ;;  %2114 = vpow2.f32 %v992_v41  ;;  %v964_v0 = vmul.f32 %v941_v52, %v3020_v42  ;;  %v996_v2 = vmul.f32 1.442695, %v965_v59 }
 0x41f   : >> { %v1204_v5 = vadd.f32 %v1202_v58, %v1182_v62  ;;  %v1207_v38 = vadd.f32 %v1205_v17, %v1183_v20  ;;  %2116 = vpow2.f32 %v990_v49 }
 0x420   : >> { %v1103_v56 = vpop.permute.xlu1 %1102  ;;  %v1099_v57 = vpop.permute.xlu0 %1098  ;;  %v1160_v63 = vrot.slane %v1044_v48, %v2973_v39  ;;  %v994_v12 = vmul.f32 1.442695, %v964_v0  ;;  %2118 = vpow2.f32 %v996_v2  ;;  %v1048_v32 = vcombine.high %v1044_v48, %v1044_v48 }
 0x421   : >> { %v1206_v15 = vmul.f32 %v2103_v6, %v1204_v5  ;;  %v1186_v54 = vmul.f32 %v1156_v37, %v1103_v56  ;;  %v1185_v55 = vmul.f32 %v1156_v37, %v1099_v57  ;;  %v1209_v58 = vmul.f32 %v2109_v40, %v1207_v38 }
 0x422   : >> { %v1046_v6 = vcombine.high %v1030_v22, %v1030_v22  ;;  %2120 = vpow2.f32 %v994_v12 }
 0x423   : >> { %v1208_v30 = vadd.f32 %v1206_v15, %v1184_v19  ;;  %v1211_v1 = vadd.f32 %v1209_v58, %v1185_v55 }
 0x424   : >> { %v1114_v3 = vpop.permute.xlu1 %1113  ;;  %v3070_v4 = vpop.permute.xlu0 %1109  ;;  %v1164_v19 = vrot.slane %v1046_v6, %v2973_v39 }
 0x425   : >> { %v1210_v46 = vmul.f32 %v2107_v31, %v1208_v30  ;;  %v2111_v62 = vpop.eup %2110  ;;  %v1188_v8 = vmul.f32 %v1160_v63, %v1114_v3  ;;  %v1187_v15 = vmul.f32 %v1160_v63, %v3070_v4 }
 0x426   : >> { %v2113_v35 = vpop.eup %2112 }
 0x427   : >> { %v1212_v61 = vadd.f32 %v1210_v46, %v1186_v54  ;;  %v1213_v18 = vmul.f32 %v2113_v35, %v1211_v1  ;;  %v1168_v46 = vrot.slane %v1048_v32, %v2973_v39 }
 0x428   : >> { %v3075_v13 = vpop.permute.xlu1 %1124  ;;  %v3077_v14 = vpop.permute.xlu0 %1120 }
 0x429   : >> { %v1214_v43 = vmul.f32 %v2111_v62, %v1212_v61  ;;  %v2115_v17 = vpop.eup %2114  ;;  %v1215_v31 = vadd.f32 %v1213_v18, %v1187_v15  ;;  %v1190_v36 = vmul.f32 %v1164_v19, %v3075_v13  ;;  %v1189_v37 = vmul.f32 %v1164_v19, %v3077_v14 }
 0x42a   : >> { %v2117_v4 = vpop.eup %2116 }
 0x42b   : >> { %v1216_v22 = vadd.f32 %v1214_v43, %v1188_v8  ;;  %v2119_v58 = vpop.eup %2118 }
 0x42c   : >> { %v1235_v23 = vpop.permute.xlu1 %1234  ;;  %v1231_v29 = vpop.permute.xlu0 %1230 }
 0x42d   : >> { %v1314_v16 = vmul.f32 %v1235_v23, %v3050_v24  ;;  %v1313_v42 = vmul.f32 %v1231_v29, %v3048_v21  ;;  %v1218_v34 = vmul.f32 %v2115_v17, %v1216_v22 }
 0x42f   : >> { %v1220_v55 = vadd.f32 %v1218_v34, %v1190_v36 }
 0x430   : >> { %v1246_v44 = vpop.permute.xlu1 %1245  ;;  %v1242_v45 = vpop.permute.xlu0 %1241 }
 0x431   : >> { %v1316_v56 = vmul.f32 %v1246_v44, %v3057_v47  ;;  %v1315_v57 = vmul.f32 %v1242_v45, %v3062_v53  ;;  %v1222_v43 = vmul.f32 %v2119_v58, %v1220_v55 }
 0x433   : >> { %v1336_v47 = vadd.f32 %v1316_v56, %v1315_v57 }
 0x434   : >> { %v1257_v50 = vpop.permute.xlu1 %1256  ;;  %v1253_v60 = vpop.permute.xlu0 %1252 }
 0x435   : >> { %v1318_v9 = vmul.f32 %v1257_v50, %v1204_v5  ;;  %v1317_v11 = vmul.f32 %v1253_v60, %v1203_v10  ;;  %v1329_v10 = vadd.f32 %v1314_v16, %v1313_v42  ;;  %v1337_v23 = vrot.slane %v1336_v47, 4 }
 0x437   : >> { %v1343_v26 = vadd.f32 %v1318_v9, %v1317_v11  ;;  %v1330_v44 = vrot.slane %v1329_v10, 4  ;;  %v1338_v49 = vadd.f32 %v1337_v23, %v1336_v47 }
 0x438   : >> { %v1136_v7 = vpop.permute.xlu1 %1135  ;;  %v1132_v51 = vpop.permute.xlu0 %1131 }
 0x439   : >> { %v1344_v40 = vrot.slane %v1343_v26, 4  ;;  %v1331_v13 = vadd.f32 %v1330_v44, %v1329_v10  ;;  %v1192_v0 = vmul.f32 %v1168_v46, %v1136_v7  ;;  %v1191_v2 = vmul.f32 %v1168_v46, %v1132_v51 }
 0x43b   : >> { %v1345_v59 = vadd.f32 %v1344_v40, %v1343_v26  ;;  %v1332_v15 = vrot.slane %v1331_v13, 2 }
 0x43c   : >> { %v1268_v20 = vpop.permute.xlu1 %1267  ;;  %v1264_v53 = vpop.permute.xlu0 %1263 }
 0x43d   : >> { %v1320_v3 = vmul.f32 %v1268_v20, %v1208_v30  ;;  %v1319_v5 = vmul.f32 %v1264_v53, %v1207_v38  ;;  %v1217_v38 = vmul.f32 %v2117_v4, %v1215_v31  ;;  %v1346_v8 = vrot.slane %v1345_v59, 2 }
 0x43e   : >> { %v1224_v20 = vadd.f32 %v1222_v43, %v1192_v0   ;;  %v1333_v10 = vadd.f32 %v1332_v15, %v1331_v13  ;;  %v2124_v43 = vld [vmem:[#allocation25 + $0x10] sm:$0xff] (%p843_p10)  }
 0x43f   : >> { %v1350_v24 = vadd.f32 %v1320_v3, %v1319_v5  ;;  %v1219_v63 = vadd.f32 %v1217_v38, %v1189_v37  ;;  %v1347_v51 = vadd.f32 %v1346_v8, %v1345_v59  ;;  %v2125_v8 = vld [vmem:[#allocation25 + $0x18] sm:$0xff] (%p843_p10)  }
 0x440   : >> { %v1279_v21 = vpop.permute.xlu1 %1278  ;;  %v1275_v29 = vpop.permute.xlu0 %1274  ;;  %v1334_v37 = vrot.slane %v1333_v10, 1  ;;  %1411 = vst [vmem:[#allocation9 + $0x8] sm:$0xff] (%p843_p10), %v1224_v20 }
 0x441   : >> { %v1322_v41 = vmul.f32 %v1279_v21, %v1212_v61  ;;  %v1351_v45 = vrot.slane %v1350_v24, 4  ;;  %v1321_v30 = vmul.f32 %v1275_v29, %v1211_v1  ;;  %v2121_v61 = vpop.eup %2120  ;;  %v1339_v1 = vrot.slane %v1338_v49, 2 }
 0x442   : >> { %v1221_v42 = vmul.f32 %v2121_v61, %v1219_v63  ;;  %v1348_v34 = vrot.slane %v1347_v51, 1 }
 0x443   : >> { %v1357_v52 = vadd.f32 %v1322_v41, %v1321_v30  ;;  %v1352_v62 = vadd.f32 %v1351_v45, %v1350_v24  ;;  %v1340_v53 = vadd.f32 %v1339_v1, %v1338_v49 }
 0x444   : >> { %v1290_v48 = vpop.permute.xlu1 %1289  ;;  %v1286_v54 = vpop.permute.xlu0 %1285  ;;  %v1223_v17 = vadd.f32 %v1221_v42, %v1191_v2   ;;  %v1349_v49 = vadd.f32 %v1348_v34, %v1347_v51 }
 0x445   : >> { %v1324_v50 = vmul.f32 %v1290_v48, %v1216_v22  ;;  %v1323_v60 = vmul.f32 %v1286_v54, %v1215_v31  ;;  %v1358_v14 = vrot.slane %v1357_v52, 4  ;;  %v1353_v16 = vrot.slane %v1352_v62, 2 }
 0x446   : >> { %v1341_v23 = vrot.slane %v1340_v53, 1  ;;  %v1335_v48 = vadd.f32 %v1334_v37, %v1333_v10  ;;  %1410 = vst [vmem:[#allocation9] sm:$0xff] (%p843_p10), %v1223_v17 }
 0x447   : >> { %v1364_v35 = vadd.f32 %v1324_v50, %v1323_v60  ;;  %v1359_v6 = vadd.f32 %v1358_v14, %v1357_v52  ;;  %v1354_v31 = vadd.f32 %v1353_v16, %v1352_v62 }
 0x448   : >> { %v1301_v56 = vpop.permute.xlu1 %1300  ;;  %v1297_v57 = vpop.permute.xlu0 %1296  ;;  %v1342_v30 = vadd.f32 %v1341_v23, %v1340_v53 }
 0x449   : >> { %v1365_v9 = vrot.slane %v1364_v35, 4  ;;  %v1326_v11 = vmul.f32 %v1301_v56, %v1220_v55  ;;  %v1325_v12 = vmul.f32 %v1297_v57, %v1219_v63  ;;  %v1360_v18 = vrot.slane %v1359_v6, 2  ;;  %v2123_v57 = vld [vmem:[#allocation25 + $0x8] sm:$0xff] (%p843_p10)  }
 0x44a   : >> { %v1355_v40 = vrot.slane %v1354_v31, 1  ;;  %v1394_v59 = vsel %vm1393_vm4, %v1342_v30, %v1335_v48  ;;  %v2541_v56 = vmov (%p843_p10), 0.0  }
 0x44b   : >> { %v1366_v19 = vadd.f32 %v1365_v9, %v1364_v35  ;;  %v1371_v47 = vadd.f32 %v1326_v11, %v1325_v12  ;;  %v1361_v32 = vadd.f32 %v1360_v18, %v1359_v6  ;;  %v1396_v13 = vsel %vm1395_vm5, %v1349_v49, %v1394_v59  ;;  %v2122_v6 = vld [vmem:[#allocation25] sm:$0xff] (%p843_p10)   ;;  %1819 = vmatprep.subr.bf16.mxu0 (%p843_p10), %v2541_v56  ;;  %v1415_v12 = vld [vmem:[#allocation3 + $0x8] sm:$0xff] (%p843_p10) }
 0x44c   : >> { %v1312_v7 = vpop.permute.xlu1 %1311  ;;  %v1308_v22 = vpop.permute.xlu0 %1307  ;;  %v1356_v54 = vadd.f32 %v1355_v40, %v1354_v31  ;;  %1820 = vmatpush3.bf16.msra.mxu0 (%p843_p10), %v2122_v6  ;;  %1835 = vmatprep.mubr.msk.bf16.mxu0 (%p843_p10), %vm2542_vm11, %v2541_v56  ;;  %v2126_v9 = vld [vmem:[#allocation25 + $0x20] sm:$0xff] (%p843_p10)   ;;  %v1424_v28 = vmul.f32 (%p843_p10), %v1795_v25, %v1415_v12  ;;  %v2128_v18 = vld [vmem:[#allocation25 + $0x30] sm:$0xff] (%p843_p10)  }
 0x44d   : >> { %v1367_v26 = vrot.slane %v1366_v19, 2  ;;  %v1372_v3 = vrot.slane %v1371_v47, 4  ;;  %v1328_v5 = vmul.f32 %v1312_v7, %v1224_v20  ;;  %v1327_v4 = vmul.f32 %v1308_v22, %v1223_v17  ;;  %1821 = vmatprep.subr.bf16.mxu0 (%p843_p10), %v2541_v56  ;;  %v1414_v11 = vld [vmem:[#allocation3] sm:$0xff] (%p843_p10)  ;;  %v2129_v7 = vld [vmem:[#allocation25 + $0x38] sm:$0xff] (%p843_p10)  }
 0x44e   : >> { %v1362_v44 = vrot.slane %v1361_v32, 1  ;;  %v1398_v14 = vsel %vm1397_vm6, %v1356_v54, %v1396_v13  ;;  %v1423_v27 = vmul.f32 (%p843_p10), %v1795_v25, %v1414_v11 }
 0x44f   : >> { %v1373_v24 = vadd.f32 %v1372_v3, %v1371_v47  ;;  %v1368_v21 = vadd.f32 %v1367_v26, %v1366_v19  ;;  %v1378_v29 = vadd.f32 %v1328_v5, %v1327_v4  ;;  %v3224_v26 = vmov %v1224_v20  ;;  %v1427_v19 = vld [vmem:[#allocation4] sm:$0xff] (%p843_p10)  ;;  %v1428_v47 = vld [vmem:[#allocation4 + $0x8] sm:$0xff] (%p843_p10) }
 0x450   : >> { %v1363_v58 = vadd.f32 %v1362_v44, %v1361_v32  ;;  %1822 = vmatpush3.bf16.msra.mxu0 (%p843_p10), %v2123_v57 }
 0x451   : >> { %v1374_v36 = vrot.slane %v1373_v24, 2  ;;  %v1379_v41 = vrot.slane %v1378_v29, 4  ;;  %v1369_v38 = vrot.slane %v1368_v21, 1  ;;  %1823 = vmatprep.subr.bf16.mxu0 (%p843_p10), %v2541_v56 }
 0x452   : >> { %v1400_v61 = vsel %vm1399_vm7, %v1363_v58, %v1398_v14 }
 0x453   : >> { %v1375_v45 = vadd.f32 %v1374_v36, %v1373_v24  ;;  %v1380_v46 = vadd.f32 %v1379_v41, %v1378_v29  ;;  %v1370_v50 = vadd.f32 %v1369_v38, %v1368_v21  ;;  %v3225_v24 = vmov %v1223_v17 }
 0x454   : > { %1824 = vmatpush3.bf16.msra.mxu0 (%p843_p10), %v2124_v43 }
 0x455   : >> { %v1376_v52 = vrot.slane %v1375_v45, 1  ;;  %v1381_v55 = vrot.slane %v1380_v46, 2  ;;  %v1402_v0 = vsel %vm1401_vm8, %v1370_v50, %v1400_v61  ;;  %1825 = vmatprep.subr.bf16.mxu0 (%p843_p10), %v2541_v56 }
 0x457   : >> { %v1382_v60 = vadd.f32 %v1381_v55, %v1380_v46  ;;  %v1377_v62 = vadd.f32 %v1376_v52, %v1375_v45 }
 0x458   : > { %845 = sbr.rel (!%p843_p10) target bundleno = 921 (0x399), region = 149  ;;  %1826 = vmatpush3.bf16.msra.mxu0 (%p843_p10), %v2125_v8 }
 0x459   : >> { %v1383_v63 = vrot.slane %v1382_v60, 1  ;;  %v1404_v1 = vsel %vm1403_vm9, %v1377_v62, %v1402_v0  ;;  %1827 = vmatprep.subr.bf16.mxu0 (%p843_p10), %v2541_v56 }
 0x45b   : >> { %v1384_v35 = vadd.f32 %v1383_v63, %v1382_v60 }
 0x45c   : > { %1828 = vmatpush3.bf16.msra.mxu0 (%p843_p10), %v2126_v9 }
 0x45d   : >> { %v1406_v2 = vsel %vm1405_vm10, %v1384_v35, %v1404_v1  ;;  %1829 = vmatprep.subr.bf16.mxu0 (%p843_p10), %v2541_v56 }
 0x45e   : >> { %1409 = vst [vmem:[%s1408_s9] sm:$0xff] %v1406_v2  ;;  %s2384_s9 = scalar_lea.vmem (%p843_p10), %s3114_s12, 256 }
 0x45f   : > { %p2385_p7 = scmp.ne.s32.totalorder %s3114_s12, %s2384_s9  ;;  %p2392_p1 = scmp.lt.s32.totalorder %s2390_s19, %s2384_s9 }
 0x460   : > { %1830 = vmatpush3.bf16.msra.mxu0 %v2127_v33 }
 0x461   : > { %1831 = vmatprep.subr.bf16.mxu0 %v2541_v56  ;;  %p2386_p6 = pnand %p2385_p7, %p3229_p5  ;;  %p2393_p11 = por %p2392_p1, %p2391_p9 }
 0x463   : > { %p2387_p8 = pneg %p2386_p6 }
 0x464   : > { %1832 = vmatpush3.bf16.msra.mxu0 %v2128_v18 }
 0x465   : > { %v1412_v39 = vld [vmem:[#allocation8] sm:$0xff]  ;;  %v1413_v15 = vld [vmem:[#allocation8 + $0x8] sm:$0xff]  ;;  %1833 = vmatprep.subr.bf16.mxu0 %v2541_v56  ;;  %p2394_p12 = pnand %p2393_p11, %p2387_p8 }
 0x466   : > { %v1425_v16 = vadd.f32 %v1423_v27, %v1412_v39  ;;  %v1426_v42 = vadd.f32 %v1424_v28, %v1413_v15 }
 0x468   : > { %v1429_v20 = vmul.f32 %v1427_v19, %v1425_v16  ;;  %v1430_v53 = vmul.f32 %v1428_v47, %v1426_v42  ;;  %1834 = vmatpush3.bf16.msra.mxu0 %v2129_v7 }
 0x46a   : > { %v1431_v22 = vpack.c.bf16 %v1430_v53, %v1429_v20 }
 0x46c   : > { %1836 = vmatmul.mubr.bf16.vlgmr.msra.gmra.mrb[4].mxu0 %v1431_v22 }
 0x53f   : > { %v1530_v17 = vpop.f32.mrb[4].mxu0 }
 0x540   : > { %1537 = vst [vmem:[%s2956_s0] sm:$0xff] %v1530_v17  ;;  %v1837_v51 = vpop.f32.mrb[5].mxu0 }
 0x541   : > { %v1533_v26 = vpop.f32.mrb[6].mxu0 }
 0x542   : > { %1538 = vst [vmem:[%s2956_s0 + $0x8] sm:$0xff] %v1533_v26  ;;  %v1838_v3 = vpop.f32.mrb[7].mxu0 }
 0x543   : > { %2397 = shalt.err (!%p2394_p12)
}
 0x544   : > { %s2398_s0 = scalar_lea.hbm %s3112_s2, 256  ;;  %s2402_s18 = scalar_lea.hbm %s3228_s4, 1024 }
 0x545   : > { %p2399_p13 = scmp.ne.s32.totalorder %s3112_s2, %s2398_s0  ;;  %p2403_p4 = scmp.lt.u32.totalorder %s3112_s2, %s3228_s4 }
 0x546   : > { %p2404_p2 = scmp.lt.u32.totalorder %s2402_s18, %s2398_s0  ;;  %p2406_p7 = scmp.lt.u32.totalorder %s2398_s0, %s3112_s2 }
 0x547   : > { %p2400_p0 = pnand %p2399_p13, %p3229_p5 }
 0x548   : > { %p2405_p10 = por %p2404_p2, %p2403_p4 }
 0x549   : > { %p2401_p3 = pneg %p2400_p0 }
 0x54a   : > { %p2407_p6 = por %p2406_p7, %p2405_p10 }
 0x54c   : > { %p2408_p8 = pnand %p2407_p6, %p2401_p3 }
 0x54e   : > { %2411 = shalt.err (!%p2408_p8)
}
 0x54f   : > { %s2544_s9 = smov 128   ;;  %s2545_s20 = smov 8  }
 0x550   : > { %1873 = dma.vmem_to_hbm [thread:$0]  (%p3229_p5), %s3114_s12, 256, %s3112_s2, %s1540_s25, %s2544_s9, %s2544_s9, %s2545_s20  }
 0x551 PF: > { %p1925_p9 = scmp.ge.s32.totalorder %s2510_s16, 2  ;;  %s1570_s13 = sand.u32 1, %s2482_s30  }
 0x552   : > { %p3230_p1 = scmp.ne.s32.totalorder %s3215_s28, 0  ;;  %s1571_s19 = scalar_lea.sflag [#allocation13], %s1570_s13 }
 0x554   : > { %p1905_p11 = pnand %p1925_p9, %p3230_p1 }
 0x556   : > { %2477 = dma.done.wait (!%p1905_p11), %s1571_s19, 256  }
 0x557   : > { %2479 = vsyncadd (!%p1905_p11), %s1571_s19, 4294967040  ;;  %s29_s16 = sadd.s32 1, %s2510_s16   ;;  %s3231_s30 = smov %s2486_s10 }
 0x558   : > { %p26_p12 = scmp.ge.s32.totalorder %s29_s16, 6   ;;  %s3232_s10 = smov %s2490_s11 }
 0x559   : > { %s3233_s11 = smov %s2879_s24  ;;  %s3234_s12 = smov %s2502_s14 }
 0x55a   : > { %s3235_s13 = smov %s2506_s15  ;;  %s3236_s14 = smov %s3239_s27 }
 0x55b   : > { %s3237_s15 = smov %s3243_s21  ;;  %28 = sbr.rel (!%p26_p12) target bundleno = 18 (0x12), region = 160 }
 0x562   :  { %1576 = vsyncpa [#allocation12], 1 }
 0x563   :  { %1578 = vsyncpa [#allocation12 + $0x1], 1 }
 0x564   :  { %1579 = vsyncpa [#allocation15], 1 }
 0x565   :  { %1580 = vsyncpa [#allocation18], 1 }
 0x566   :  { %1581 = vsyncpa [#allocation21], 1 }
 0x567   :  { %1582 = vsyncpa [#allocation24], 1 }
 0x568   :  { %1583 = vsyncpa [#allocation13], 1 }
 0x569   :  { %1585 = vsyncpa [#allocation13 + $0x1], 1 }

</bundles_post_ra>
